<compile_context>
chip_gen: v7x
topology: tpu7x:2x2x1
jax: 0.10.0
libtpu: 0.0.40
codegen_flags: <defaults>
</compile_context>

<pallas_src>
import functools

import jax
import jax.numpy as jnp
from jax.experimental import pallas as pl
from jax.experimental.pallas import tpu as pltpu

LANE = 128


def _round_up(x, m):
    return ((x + m - 1) // m) * m


def _vmem_budget_bytes():
    """Safe scoped-VMEM budget for the current chip (v5e/v6e: 128 MiB physical,
    v7x: 64 MiB).  Keep ~25% headroom; fall back to a v7x-safe 48 MiB."""
    try:
        cap = int(pltpu.get_tpu_info().vmem_capacity_bytes)
    except Exception:
        cap = 64 * 1024 * 1024
    return max(32 * 1024 * 1024, (cap * 3) // 4)


def _pick_tile(n_p, candidates, *, prefer_multi_block=False):
    """Largest candidate tile dividing n_p; optionally require >=2 blocks so the
    'parallel' row axis can be split across v7x's 2 TensorCores."""
    if prefer_multi_block:
        for t in candidates:
            if n_p % t == 0 and n_p // t >= 2:
                return t
    for t in candidates:
        if n_p % t == 0:
            return t
    return n_p


# ---------------------------------------------------------------------------
# Fused path (small graphs): the entire forward in ONE pallas_call.
# adj, x and all weights are VMEM-resident; no intermediate HBM traffic.
# ---------------------------------------------------------------------------
def _fused_kernel(adj_ref, x_ref, w1_ref, b1_ref, w2_ref, b2_ref, wc_ref, bc_ref,
                  out_ref, *, n_valid_classes):
    bf = jnp.bfloat16
    xw1 = jnp.dot(x_ref[...], w1_ref[...], preferred_element_type=jnp.float32)
    h1 = jnp.maximum(
        jnp.dot(adj_ref[...], xw1.astype(bf), preferred_element_type=jnp.float32)
        + b1_ref[...], 0.0)
    # TODO(synk): F.dropout(training=True) has no deterministic inference
    # equivalent; forward runs in eval mode (dropout == identity).
    hw2 = jnp.dot(h1.astype(bf), w2_ref[...], preferred_element_type=jnp.float32)
    h2 = (jnp.dot(adj_ref[...], hw2.astype(bf), preferred_element_type=jnp.float32)
          + b2_ref[...])
    logits = (jnp.dot(h2.astype(bf), wc_ref[...], preferred_element_type=jnp.float32)
              + bc_ref[...])
    # mask zero-padded class lanes so they cannot perturb the log_softmax
    col = jax.lax.broadcasted_iota(jnp.int32, logits.shape, 1)
    logits = jnp.where(col < n_valid_classes, logits, -jnp.inf)
    m = jnp.max(logits, axis=-1, keepdims=True)
    shifted = logits - m
    lse = jnp.log(jnp.sum(jnp.exp(shifted), axis=-1, keepdims=True))
    out_ref[...] = (shifted - lse).astype(out_ref.dtype)


def _fused_forward(adj_b, x_b, w1_b, b1_f, w2_b, b2_f, wc_b, bc_f, *,
                   n_valid_classes, vmem_limit):
    n_p = adj_b.shape[0]
    f_p = x_b.shape[1]
    h_p = w1_b.shape[1]
    c_p = wc_b.shape[1]
    cost = pl.CostEstimate(
        flops=2 * n_p * f_p * h_p + 4 * n_p * n_p * h_p
              + 2 * n_p * h_p * h_p + 2 * n_p * h_p * c_p,
        transcendentals=n_p * c_p,
        bytes_accessed=n_p * n_p * 2 + n_p * f_p * 2
                       + (f_p * h_p + h_p * h_p + h_p * c_p) * 2
                       + (2 * h_p + c_p) * 4 + n_p * c_p * 4,
    )

    def full(shape):
        return pl.BlockSpec(shape, lambda i: (0, 0))

    kernel = functools.partial(_fused_kernel, n_valid_classes=n_valid_classes)
    return pl.pallas_call(
        kernel,
        out_shape=jax.ShapeDtypeStruct((n_p, c_p), jnp.float32),
        grid_spec=pltpu.PrefetchScalarGridSpec(
            num_scalar_prefetch=0,
            grid=(1,),
            in_specs=[
                full((n_p, n_p)), full((n_p, f_p)),
                full((f_p, h_p)), full((1, h_p)),
                full((h_p, h_p)), full((1, h_p)),
                full((h_p, c_p)), full((1, c_p)),
            ],
            out_specs=full((n_p, c_p)),
        ),
        compiler_params=pltpu.CompilerParams(
            dimension_semantics=("arbitrary",),
            vmem_limit_bytes=vmem_limit,
        ),
        cost_estimate=cost,
    )(adj_b, x_b, w1_b, b1_f, w2_b, b2_f, wc_b, bc_f)


# ---------------------------------------------------------------------------
# Tiled path, kernel 1: dense feature transform  out = X @ W  (row-tiled)
# ---------------------------------------------------------------------------
def _transform_kernel(x_ref, w_ref, out_ref):
    out_ref[...] = jnp.dot(
        x_ref[...], w_ref[...], preferred_element_type=jnp.float32
    ).astype(out_ref.dtype)


def _transform(x, w, *, tm, vmem_limit):
    n, f = x.shape
    h = w.shape[1]
    cost = pl.CostEstimate(
        flops=2 * n * f * h,
        transcendentals=0,
        bytes_accessed=n * f * 2 + f * h * 2 + n * h * 2,
    )
    return pl.pallas_call(
        _transform_kernel,
        out_shape=jax.ShapeDtypeStruct((n, h), jnp.bfloat16),
        grid_spec=pltpu.PrefetchScalarGridSpec(
            num_scalar_prefetch=0,
            grid=(n // tm,),
            in_specs=[
                pl.BlockSpec((tm, f), lambda i: (i, 0)),
                pl.BlockSpec((f, h), lambda i: (0, 0)),   # weights stay resident
            ],
            out_specs=pl.BlockSpec((tm, h), lambda i: (i, 0)),
        ),
        compiler_params=pltpu.CompilerParams(
            dimension_semantics=("parallel",),
            vmem_limit_bytes=vmem_limit,
        ),
        cost_estimate=cost,
    )(x, w)


# ---------------------------------------------------------------------------
# Tiled path, kernel 2: GCN aggregation  out = relu(adj @ S + b)
# (row-parallel, K-reduction; S either VMEM-resident or streamed)
# ---------------------------------------------------------------------------
def _agg_relu_kernel(adj_ref, s_ref, b_ref, out_ref, acc_ref, *, tk, s_resident):
    k = pl.program_id(1)

    @pl.when(k == 0)
    def _():
        acc_ref[...] = jnp.zeros_like(acc_ref)

    if s_resident:
        s_blk = s_ref[pl.ds(pl.multiple_of(k * tk, tk), tk), :]
    else:
        s_blk = s_ref[...]
    acc_ref[...] += jnp.dot(adj_ref[...], s_blk, preferred_element_type=jnp.float32)

    @pl.when(k == pl.num_programs(1) - 1)
    def _():
        out_ref[...] = jnp.maximum(acc_ref[...] + b_ref[...], 0.0).astype(out_ref.dtype)


def _aggregate_relu(adj, s, b, *, tm, tk, s_resident, vmem_limit):
    n = adj.shape[0]
    h = s.shape[1]
    s_reads = 1 if s_resident else (n // tm)
    cost = pl.CostEstimate(
        flops=2 * n * n * h,
        transcendentals=0,
        bytes_accessed=n * n * 2 + s_reads * n * h * 2 + h * 4 + n * h * 2,
    )
    if s_resident:
        s_spec = pl.BlockSpec((n, h), lambda i, k: (0, 0))     # whole S resident
    else:
        s_spec = pl.BlockSpec((tk, h), lambda i, k: (k, 0))    # streamed per K tile
    kernel = functools.partial(_agg_relu_kernel, tk=tk, s_resident=s_resident)
    return pl.pallas_call(
        kernel,
        out_shape=jax.ShapeDtypeStruct((n, h), jnp.bfloat16),
        grid_spec=pltpu.PrefetchScalarGridSpec(
            num_scalar_prefetch=0,
            grid=(n // tm, n // tk),
            in_specs=[
                pl.BlockSpec((tm, tk), lambda i, k: (i, k)),   # adj tile (streams)
                s_spec,                                        # transformed features
                pl.BlockSpec((1, h), lambda i, k: (0, 0)),     # bias (resident)
            ],
            out_specs=pl.BlockSpec((tm, h), lambda i, k: (i, 0)),
            scratch_shapes=[pltpu.VMEM((tm, h), jnp.float32)],
        ),
        compiler_params=pltpu.CompilerParams(
            dimension_semantics=("parallel", "arbitrary"),
            vmem_limit_bytes=vmem_limit,
        ),
        cost_estimate=cost,
    )(adj, s, b)


# ---------------------------------------------------------------------------
# Tiled path, kernel 3: aggregation + linear classifier + masked log_softmax
#   h2 = adj @ S + b2 ; logits = h2 @ Wc + bc ; out = log_softmax(logits)
# ---------------------------------------------------------------------------
def _agg_classify_kernel(adj_ref, s_ref, b2_ref, wc_ref, bc_ref, out_ref, acc_ref,
                         *, tk, s_resident, n_valid_classes):
    k = pl.program_id(1)

    @pl.when(k == 0)
    def _():
        acc_ref[...] = jnp.zeros_like(acc_ref)

    if s_resident:
        s_blk = s_ref[pl.ds(pl.multiple_of(k * tk, tk), tk), :]
    else:
        s_blk = s_ref[...]
    acc_ref[...] += jnp.dot(adj_ref[...], s_blk, preferred_element_type=jnp.float32)

    @pl.when(k == pl.num_programs(1) - 1)
    def _():
        h2 = acc_ref[...] + b2_ref[...]                                   # f32
        logits = jnp.dot(
            h2.astype(jnp.bfloat16), wc_ref[...],
            preferred_element_type=jnp.float32,
        ) + bc_ref[...]
        col = jax.lax.broadcasted_iota(jnp.int32, logits.shape, 1)
        logits = jnp.where(col < n_valid_classes, logits, -jnp.inf)
        m = jnp.max(logits, axis=-1, keepdims=True)
        shifted = logits - m
        lse = jnp.log(jnp.sum(jnp.exp(shifted), axis=-1, keepdims=True))
        out_ref[...] = shifted - lse


def _aggregate_classify(adj, s, b2, wc, bc, *, n_valid_classes, tm, tk,
                        s_resident, vmem_limit):
    n = adj.shape[0]
    h = s.shape[1]
    c = wc.shape[1]
    s_reads = 1 if s_resident else (n // tm)
    cost = pl.CostEstimate(
        flops=2 * n * n * h + 2 * n * h * c,
        transcendentals=n * c,
        bytes_accessed=(n * n * 2 + s_reads * n * h * 2 + h * c * 2
                        + (h + c) * 4 + n * c * 4),
    )
    if s_resident:
        s_spec = pl.BlockSpec((n, h), lambda i, k: (0, 0))
    else:
        s_spec = pl.BlockSpec((tk, h), lambda i, k: (k, 0))
    kernel = functools.partial(_agg_classify_kernel, tk=tk, s_resident=s_resident,
                               n_valid_classes=n_valid_classes)
    return pl.pallas_call(
        kernel,
        out_shape=jax.ShapeDtypeStruct((n, c), jnp.float32),
        grid_spec=pltpu.PrefetchScalarGridSpec(
            num_scalar_prefetch=0,
            grid=(n // tm, n // tk),
            in_specs=[
                pl.BlockSpec((tm, tk), lambda i, k: (i, k)),   # adj tile (streams)
                s_spec,                                        # h1 @ W2
                pl.BlockSpec((1, h), lambda i, k: (0, 0)),     # b2 (resident)
                pl.BlockSpec((h, c), lambda i, k: (0, 0)),     # classifier weight
                pl.BlockSpec((1, c), lambda i, k: (0, 0)),     # classifier bias
            ],
            out_specs=pl.BlockSpec((tm, c), lambda i, k: (i, 0)),
            scratch_shapes=[pltpu.VMEM((tm, h), jnp.float32)],
        ),
        compiler_params=pltpu.CompilerParams(
            dimension_semantics=("parallel", "arbitrary"),
            vmem_limit_bytes=vmem_limit,
        ),
        cost_estimate=cost,
    )(adj, s, b2, wc, bc)


# ---------------------------------------------------------------------------
# Forward wrapper: pad to lane-dense shapes, cast MXU operands to bf16, pick
# the fused (small) or tiled (large) path, slice the padded output back.
# ---------------------------------------------------------------------------
def node_classifier_forward(x, adj, params, *, force_tiled=False, force_stream_s=False):
    """x: (N, F) f32, adj: (N, N) f32 dense normalized adjacency (SpMM densified)."""
    n, f = x.shape
    h = params["w1"].shape[1]
    c = params["wc"].shape[1]

    n_p = _round_up(n, LANE)
    f_p = _round_up(f, LANE)
    h_p = _round_up(h, LANE)
    c_p = _round_up(c, LANE)

    def pad2(a, rows, cols):
        return jnp.pad(a, ((0, rows - a.shape[0]), (0, cols - a.shape[1])))

    x_b = pad2(x, n_p, f_p).astype(jnp.bfloat16)
    adj_b = pad2(adj, n_p, n_p).astype(jnp.bfloat16)      # adj lives in HBM as bf16
    w1_b = pad2(params["w1"], f_p, h_p).astype(jnp.bfloat16)
    w2_b = pad2(params["w2"], h_p, h_p).astype(jnp.bfloat16)
    wc_b = pad2(params["wc"], h_p, c_p).astype(jnp.bfloat16)
    b1_f = pad2(params["b1"], 1, h_p).astype(jnp.float32)
    b2_f = pad2(params["b2"], 1, h_p).astype(jnp.float32)
    bc_f = pad2(params["bc"], 1, c_p).astype(jnp.float32)

    budget = _vmem_budget_bytes()

    # --- small-graph fast path: everything VMEM-resident, one launch --------
    fused_bytes = (n_p * n_p * 2 + n_p * f_p * 2
                   + (f_p * h_p + h_p * h_p + h_p * c_p) * 2
                   + 4 * n_p * h_p * 4 + 2 * n_p * c_p * 4)
    if (not force_tiled) and 2 * fused_bytes <= budget:
        out_p = _fused_forward(adj_b, x_b, w1_b, b1_f, w2_b, b2_f, wc_b, bc_f,
                               n_valid_classes=c, vmem_limit=budget)
        return out_p[:n, :c]

    # --- large-graph tiled path ----------------------------------------------
    # K tile: prefer 256-multiples (v6e/v7x 2x256^2 MXU); row tile: prefer >=2
    # blocks so the "parallel" axis feeds both v7x TensorCores.
    tk = _pick_tile(n_p, (512, 256, 128))
    tm = _pick_tile(n_p, (512, 256, 128), prefer_multi_block=True)

    # Keep the transformed-feature operand VMEM-resident when it fits the
    # chip-derived budget; this kills the (n_p/tm)-fold HBM re-read.
    resident_need = (2 * n_p * h_p * 2          # resident S (assume 2 buffers)
                     + 4 * tm * tk * 2          # double-buffered adj tiles
                     + 2 * h_p * c_p * 2        # classifier weights
                     + tm * h_p * 4             # accumulator
                     + 2 * tm * c_p * 4         # output buffers
                     + (4 << 20))               # slack
    s_resident = (not force_stream_s) and resident_need <= budget

    xw1 = _transform(x_b, w1_b, tm=tm, vmem_limit=budget)            # (n_p, h_p) bf16
    h1 = _aggregate_relu(adj_b, xw1, b1_f, tm=tm, tk=tk,
                         s_resident=s_resident, vmem_limit=budget)   # (n_p, h_p) bf16
    # TODO(synk): F.dropout(training=True) has no deterministic inference
    # equivalent; forward is implemented in eval mode (dropout == identity).
    hw2 = _transform(h1, w2_b, tm=tm, vmem_limit=budget)             # (n_p, h_p) bf16
    out_p = _aggregate_classify(adj_b, hw2, b2_f, wc_b, bc_f,
                                n_valid_classes=c, tm=tm, tk=tk,
                                s_resident=s_resident, vmem_limit=budget)
    return out_p[:n, :c]


# ---------------------------------------------------------------------------
# Parameter init & synthetic graph (host-side helpers)
# ---------------------------------------------------------------------------
def init_params(key, input_dim, hidden_dim, n_classes):
    """Deterministic parameter init (uniform fan-in scaling, like the torch modules)."""
    k1, k2, k3, k4, k5, k6 = jax.random.split(key, 6)
    s1 = 1.0 / jnp.sqrt(input_dim)
    s2 = 1.0 / jnp.sqrt(hidden_dim)
    return {
        "w1": jax.random.uniform(k1, (input_dim, hidden_dim), jnp.float32, -s1, s1),
        "b1": jax.random.uniform(k2, (1, hidden_dim), jnp.float32, -s1, s1),
        "w2": jax.random.uniform(k3, (hidden_dim, hidden_dim), jnp.float32, -s2, s2),
        "b2": jax.random.uniform(k4, (1, hidden_dim), jnp.float32, -s2, s2),
        # nn.Linear stores (n_classes, hidden); we keep the transposed (hidden, n_classes).
        "wc": jax.random.uniform(k5, (hidden_dim, n_classes), jnp.float32, -s2, s2),
        "bc": jax.random.uniform(k6, (1, n_classes), jnp.float32, -s2, s2),
    }


def build_normalized_adj(n_nodes):
    """Synthetic ring graph; A_hat = D^-1/2 (A + I) D^-1/2 (standard GCN normalization).
    TODO(synk): torch.sparse_coo SpMM is realized as a dense (bf16) matmul here."""
    idx = jnp.arange(n_nodes)
    adj = jnp.zeros((n_nodes, n_nodes), jnp.float32)
    adj = adj.at[idx, (idx + 1) % n_nodes].set(1.0)
    adj = adj.at[(idx + 1) % n_nodes, idx].set(1.0)
    adj = adj + jnp.eye(n_nodes, dtype=jnp.float32)      # self-loops
    deg = jnp.sum(adj, axis=1)
    d_inv_sqrt = 1.0 / jnp.sqrt(deg)
    return adj * d_inv_sqrt[:, None] * d_inv_sqrt[None, :]


def _ref_forward_matched(x, adj, params):
    """Plain-JAX reference with the SAME dtype policy as the kernels (bf16 MXU inputs,
    f32 accumulation / elementwise)."""
    bf = jnp.bfloat16
    x_b, adj_b = x.astype(bf), adj.astype(bf)
    w1, w2, wc = (params["w1"].astype(bf), params["w2"].astype(bf), params["wc"].astype(bf))
    xw1 = jnp.dot(x_b, w1, preferred_element_type=jnp.float32).astype(bf)
    h1 = jnp.maximum(jnp.dot(adj_b, xw1, preferred_element_type=jnp.float32)
                     + params["b1"], 0.0).astype(bf)
    hw2 = jnp.dot(h1, w2, preferred_element_type=jnp.float32).astype(bf)
    h2 = jnp.dot(adj_b, hw2, preferred_element_type=jnp.float32) + params["b2"]
    logits = jnp.dot(h2.astype(bf), wc, preferred_element_type=jnp.float32) + params["bc"]
    return jax.nn.log_softmax(logits, axis=1)


def _ref_forward_f32(x, adj, params):
    """Pure f32 reference (original PyTorch semantics)."""
    h1 = jnp.maximum(adj @ (x @ params["w1"]) + params["b1"], 0.0)
    h2 = adj @ (h1 @ params["w2"]) + params["b2"]
    logits = h2 @ params["wc"] + params["bc"]
    return jax.nn.log_softmax(logits, axis=1)


if __name__ == "__main__":
    N_NODES, INPUT_DIM, HIDDEN_DIM, N_CLASSES = 256, 32, 32, 8

    key = jax.random.PRNGKey(0)
    kx, kp = jax.random.split(key)
    x = jax.random.normal(kx, (N_NODES, INPUT_DIM), jnp.float32)
    adj = build_normalized_adj(N_NODES)
    params = init_params(kp, INPUT_DIM, HIDDEN_DIM, N_CLASSES)

    # 1) Small graph: fused single-launch path (default dispatch).
    fwd = jax.jit(node_classifier_forward)
    out = jax.block_until_ready(fwd(x, adj, params))
    assert out.shape == (N_NODES, N_CLASSES)
    ref_bf16 = _ref_forward_matched(x, adj, params)
    assert jnp.allclose(out, ref_bf16, atol=1e-3, rtol=1e-3)
    ref_f32 = _ref_forward_f32(x, adj, params)
    assert jnp.allclose(out, ref_f32, atol=5e-2, rtol=5e-2)

    # 2) Larger graph: exercise the tiled path with VMEM-resident S ...
    N2 = 1024
    x2 = jax.random.normal(kx, (N2, INPUT_DIM), jnp.float32)
    adj2 = build_normalized_adj(N2)
    ref2 = _ref_forward_matched(x2, adj2, params)

    fwd_tiled = jax.jit(functools.partial(node_classifier_forward, force_tiled=True))
    out2 = jax.block_until_ready(fwd_tiled(x2, adj2, params))
    assert out2.shape == (N2, N_CLASSES)
    assert jnp.allclose(out2, ref2, atol=1e-3, rtol=1e-3)

    # 3) ... and the streaming-S fallback (used when S would not fit VMEM).
    fwd_stream = jax.jit(functools.partial(node_classifier_forward,
                                           force_tiled=True, force_stream_s=True))
    out3 = jax.block_until_ready(fwd_stream(x2, adj2, params))
    assert jnp.allclose(out3, ref2, atol=1e-3, rtol=1e-3)

    print("KERNEL_OK")
</pallas_src>

<mosaic_0001>
module attributes {stable_mosaic.version = 11 : i64} {
  func.func @_fused_kernel(%arg0: i32, %arg1: memref<256x256xbf16, #tpu.memory_space<vmem>>, %arg2: memref<256x128xbf16, #tpu.memory_space<vmem>>, %arg3: memref<128x128xbf16, #tpu.memory_space<vmem>>, %arg4: memref<1x128xf32, #tpu.memory_space<vmem>>, %arg5: memref<128x128xbf16, #tpu.memory_space<vmem>>, %arg6: memref<1x128xf32, #tpu.memory_space<vmem>>, %arg7: memref<128x128xbf16, #tpu.memory_space<vmem>>, %arg8: memref<1x128xf32, #tpu.memory_space<vmem>>, %arg9: memref<256x128xf32, #tpu.memory_space<vmem>>) attributes {dimension_semantics = [#tpu.dimension_semantics<arbitrary>], iteration_bounds = array<i64: 1>, scalar_prefetch = 0 : i64, scratch_operands = 0 : i64, tpu.core_type = #tpu.core_type<tc>, window_params = [{pipeline_mode = #tpu.pipeline_mode<synchronous>, transform_indices = @transform_0, window_bounds = array<i64: 256, 256>}, {pipeline_mode = #tpu.pipeline_mode<synchronous>, transform_indices = @transform_1, window_bounds = array<i64: 256, 128>}, {pipeline_mode = #tpu.pipeline_mode<synchronous>, transform_indices = @transform_2, window_bounds = array<i64: 128, 128>}, {pipeline_mode = #tpu.pipeline_mode<synchronous>, transform_indices = @transform_3, window_bounds = array<i64: 1, 128>}, {pipeline_mode = #tpu.pipeline_mode<synchronous>, transform_indices = @transform_4, window_bounds = array<i64: 128, 128>}, {pipeline_mode = #tpu.pipeline_mode<synchronous>, transform_indices = @transform_5, window_bounds = array<i64: 1, 128>}, {pipeline_mode = #tpu.pipeline_mode<synchronous>, transform_indices = @transform_6, window_bounds = array<i64: 128, 128>}, {pipeline_mode = #tpu.pipeline_mode<synchronous>, transform_indices = @transform_7, window_bounds = array<i64: 1, 128>}, {pipeline_mode = #tpu.pipeline_mode<synchronous>, transform_indices = @transform_8, window_bounds = array<i64: 256, 128>}]} {
    %c0 = arith.constant 0 : index
    %c0_0 = arith.constant 0 : index
    %0 = vector.load %arg2[%c0, %c0_0] : memref<256x128xbf16, #tpu.memory_space<vmem>>, vector<256x128xbf16>
    %c0_1 = arith.constant 0 : index
    %c0_2 = arith.constant 0 : index
    %1 = vector.load %arg3[%c0_1, %c0_2] : memref<128x128xbf16, #tpu.memory_space<vmem>>, vector<128x128xbf16>
    %cst = arith.constant dense<0.000000e+00> : vector<256x128xf32>
    %2 = tpu.matmul %0, %1, %cst {dimension_numbers = #tpu.dot_dimension_numbers<[1], [0], [0], [1], [0, 0, 1, 1], [], []>} : vector<256x128xbf16>, vector<128x128xbf16>, vector<256x128xf32> -> vector<256x128xf32>
    %c0_3 = arith.constant 0 : index
    %c0_4 = arith.constant 0 : index
    %3 = vector.load %arg1[%c0_3, %c0_4] : memref<256x256xbf16, #tpu.memory_space<vmem>>, vector<256x256xbf16>
    %4 = arith.truncf %2 : vector<256x128xf32> to vector<256x128xbf16>
    %cst_5 = arith.constant dense<0.000000e+00> : vector<256x128xf32>
    %5 = tpu.matmul %3, %4, %cst_5 {dimension_numbers = #tpu.dot_dimension_numbers<[1], [0], [0], [1], [0, 0, 1, 1], [], []>} : vector<256x256xbf16>, vector<256x128xbf16>, vector<256x128xf32> -> vector<256x128xf32>
    %c0_6 = arith.constant 0 : index
    %c0_7 = arith.constant 0 : index
    %6 = vector.load %arg4[%c0_6, %c0_7] : memref<1x128xf32, #tpu.memory_space<vmem>>, vector<1x128xf32>
    %7 = vector.broadcast %6 : vector<1x128xf32> to vector<256x128xf32>
    %8 = arith.addf %5, %7 : vector<256x128xf32>
    %cst_8 = arith.constant 0.000000e+00 : f32
    %9 = vector.broadcast %cst_8 : f32 to vector<256x128xf32>
    %10 = arith.maximumf %8, %9 : vector<256x128xf32>
    %11 = arith.truncf %10 : vector<256x128xf32> to vector<256x128xbf16>
    %c0_9 = arith.constant 0 : index
    %c0_10 = arith.constant 0 : index
    %12 = vector.load %arg5[%c0_9, %c0_10] : memref<128x128xbf16, #tpu.memory_space<vmem>>, vector<128x128xbf16>
    %cst_11 = arith.constant dense<0.000000e+00> : vector<256x128xf32>
    %13 = tpu.matmul %11, %12, %cst_11 {dimension_numbers = #tpu.dot_dimension_numbers<[1], [0], [0], [1], [0, 0, 1, 1], [], []>} : vector<256x128xbf16>, vector<128x128xbf16>, vector<256x128xf32> -> vector<256x128xf32>
    %c0_12 = arith.constant 0 : index
    %c0_13 = arith.constant 0 : index
    %14 = vector.load %arg1[%c0_12, %c0_13] : memref<256x256xbf16, #tpu.memory_space<vmem>>, vector<256x256xbf16>
    %15 = arith.truncf %13 : vector<256x128xf32> to vector<256x128xbf16>
    %cst_14 = arith.constant dense<0.000000e+00> : vector<256x128xf32>
    %16 = tpu.matmul %14, %15, %cst_14 {dimension_numbers = #tpu.dot_dimension_numbers<[1], [0], [0], [1], [0, 0, 1, 1], [], []>} : vector<256x256xbf16>, vector<256x128xbf16>, vector<256x128xf32> -> vector<256x128xf32>
    %c0_15 = arith.constant 0 : index
    %c0_16 = arith.constant 0 : index
    %17 = vector.load %arg6[%c0_15, %c0_16] : memref<1x128xf32, #tpu.memory_space<vmem>>, vector<1x128xf32>
    %18 = vector.broadcast %17 : vector<1x128xf32> to vector<256x128xf32>
    %19 = arith.addf %16, %18 : vector<256x128xf32>
    %20 = arith.truncf %19 : vector<256x128xf32> to vector<256x128xbf16>
    %c0_17 = arith.constant 0 : index
    %c0_18 = arith.constant 0 : index
    %21 = vector.load %arg7[%c0_17, %c0_18] : memref<128x128xbf16, #tpu.memory_space<vmem>>, vector<128x128xbf16>
    %cst_19 = arith.constant dense<0.000000e+00> : vector<256x128xf32>
    %22 = tpu.matmul %20, %21, %cst_19 {dimension_numbers = #tpu.dot_dimension_numbers<[1], [0], [0], [1], [0, 0, 1, 1], [], []>} : vector<256x128xbf16>, vector<128x128xbf16>, vector<256x128xf32> -> vector<256x128xf32>
    %c0_20 = arith.constant 0 : index
    %c0_21 = arith.constant 0 : index
    %23 = vector.load %arg8[%c0_20, %c0_21] : memref<1x128xf32, #tpu.memory_space<vmem>>, vector<1x128xf32>
    %24 = vector.broadcast %23 : vector<1x128xf32> to vector<256x128xf32>
    %25 = arith.addf %22, %24 : vector<256x128xf32>
    %26 = tpu.iota {dimensions = array<i32: 1>} : vector<256x128xi32>
    %c8_i32 = arith.constant 8 : i32
    %27 = vector.broadcast %c8_i32 : i32 to vector<256x128xi32>
    %28 = arith.cmpi slt, %26, %27 : vector<256x128xi32>
    %cst_22 = arith.constant 0xFF800000 : f32
    %29 = vector.broadcast %cst_22 : f32 to vector<256x128xf32>
    %30 = arith.select %28, %25, %29 : vector<256x128xi1>, vector<256x128xf32>
    %cst_23 = arith.constant dense<0xFF800000> : vector<256xf32>
    %31 = vector.multi_reduction <maximumf>, %30, %cst_23 [1] : vector<256x128xf32> to vector<256xf32>
    %32 = vector.shape_cast %31 : vector<256xf32> to vector<256x1xf32>
    %33 = vector.broadcast %32 : vector<256x1xf32> to vector<256x128xf32>
    %34 = arith.subf %30, %33 : vector<256x128xf32>
    %35 = math.exp %34 : vector<256x128xf32>
    %cst_24 = arith.constant dense<0.000000e+00> : vector<256xf32>
    %36 = vector.multi_reduction <add>, %35, %cst_24 [1] : vector<256x128xf32> to vector<256xf32>
    %37 = vector.shape_cast %36 : vector<256xf32> to vector<256x1xf32>
    %38 = math.log %37 : vector<256x1xf32>
    %39 = vector.broadcast %38 : vector<256x1xf32> to vector<256x128xf32>
    %40 = arith.subf %34, %39 : vector<256x128xf32>
    %c0_25 = arith.constant 0 : index
    %c0_26 = arith.constant 0 : index
    %41 = vector.load %arg9[%c0_25, %c0_26] : memref<256x128xf32, #tpu.memory_space<vmem>>, vector<256x128xf32>
    tpu.vector_store %arg9[%c0_25, %c0_26], %40 {strides = array<i32>} : memref<256x128xf32, #tpu.memory_space<vmem>>, vector<256x128xf32>,
    return
  }
  func.func @transform_0(%arg0: i32) -> (i32, i32) {
    %c0_i32 = arith.constant 0 : i32
    %c0_i32_0 = arith.constant 0 : i32
    %c0_i32_1 = arith.constant 0 : i32
    return %c0_i32, %c0_i32_0 : i32, i32
  }
  func.func @transform_1(%arg0: i32) -> (i32, i32) {
    %c0_i32 = arith.constant 0 : i32
    %c0_i32_0 = arith.constant 0 : i32
    %c0_i32_1 = arith.constant 0 : i32
    return %c0_i32, %c0_i32_0 : i32, i32
  }
  func.func @transform_2(%arg0: i32) -> (i32, i32) {
    %c0_i32 = arith.constant 0 : i32
    %c0_i32_0 = arith.constant 0 : i32
    %c0_i32_1 = arith.constant 0 : i32
    return %c0_i32, %c0_i32_0 : i32, i32
  }
  func.func @transform_3(%arg0: i32) -> (i32, i32) {
    %c0_i32 = arith.constant 0 : i32
    %c0_i32_0 = arith.constant 0 : i32
    %c0_i32_1 = arith.constant 0 : i32
    return %c0_i32, %c0_i32_0 : i32, i32
  }
  func.func @transform_4(%arg0: i32) -> (i32, i32) {
    %c0_i32 = arith.constant 0 : i32
    %c0_i32_0 = arith.constant 0 : i32
    %c0_i32_1 = arith.constant 0 : i32
    return %c0_i32, %c0_i32_0 : i32, i32
  }
  func.func @transform_5(%arg0: i32) -> (i32, i32) {
    %c0_i32 = arith.constant 0 : i32
    %c0_i32_0 = arith.constant 0 : i32
    %c0_i32_1 = arith.constant 0 : i32
    return %c0_i32, %c0_i32_0 : i32, i32
  }
  func.func @transform_6(%arg0: i32) -> (i32, i32) {
    %c0_i32 = arith.constant 0 : i32
    %c0_i32_0 = arith.constant 0 : i32
    %c0_i32_1 = arith.constant 0 : i32
    return %c0_i32, %c0_i32_0 : i32, i32
  }
  func.func @transform_7(%arg0: i32) -> (i32, i32) {
    %c0_i32 = arith.constant 0 : i32
    %c0_i32_0 = arith.constant 0 : i32
    %c0_i32_1 = arith.constant 0 : i32
    return %c0_i32, %c0_i32_0 : i32, i32
  }
  func.func @transform_8(%arg0: i32) -> (i32, i32) {
    %c0_i32 = arith.constant 0 : i32
    %c0_i32_0 = arith.constant 0 : i32
    %c0_i32_1 = arith.constant 0 : i32
    return %c0_i32, %c0_i32_0 : i32, i32
  }
}

</mosaic_0001>

<bundles_post_ra>
// kernel: node_classifier_forward.1
= control target key start
LH: loop header
LB: loop body
LE: loop exit
PB: predicated region body
PF: predicated region fallthrough
CT: control target
= control target key end

     0   :  { %s3521_s2 = inlined_call_operand.vmem [shape: bf16[128,128], index: 2, kind: input, shape index: {}]   ;;  %s3522_s1 = inlined_call_operand.vmem [shape: bf16[256,128], index: 1, kind: input, shape index: {}]   ;;  %s3523_s0 = inlined_call_operand.vmem [shape: bf16[256,256], index: 0, kind: input, shape index: {}]   ;;  %s3524_s4 = inlined_call_operand.vmem [shape: bf16[128,128], index: 4, kind: input, shape index: {}]   ;;  %s3525_s3 = inlined_call_operand.vmem [shape: f32[1,128], index: 3, kind: input, shape index: {}]   ;;  %s3526_s6 = inlined_call_operand.vmem [shape: bf16[128,128], index: 6, kind: input, shape index: {}]   ;;  %s3527_s5 = inlined_call_operand.vmem [shape: f32[1,128], index: 5, kind: input, shape index: {}]   ;;  %s3528_s7 = inlined_call_operand.vmem [shape: f32[1,128], index: 7, kind: input, shape index: {}]   ;;  %s3529_s8 = inlined_call_operand.vmem [shape: f32[256,128], index: 8, kind: output, shape index: {}]  }
   0x1   :  { %v2386_v0 = vld [vmem:[%s3521_s2] sm:$0xff]   ;;  %v2387_v1 = vld [vmem:[%s3521_s2 + $0x8] sm:$0xff]   ;;  %v2388_v2 = vld [vmem:[%s3521_s2 + $0x10] sm:$0xff]  }
   0x2   :  { %2226 = vmatprep.subr.bf16.mxu0 %v2386_v0  ;;  %2370 = vmatprep.subr.bf16.mxu1 %v2386_v0  ;;  %v2389_v3 = vld [vmem:[%s3521_s2 + $0x18] sm:$0xff]   ;;  %v2394_v4 = vld [vmem:[%s3522_s1] sm:$0xff]   ;;  %v2391_v7 = vld [vmem:[%s3521_s2 + $0x28] sm:$0xff]  }
   0x3   :  { %2227 = vmatpush3.bf16.msra.mxu0 %v2386_v0  ;;  %2378 = vmatpush3.bf16.msra.mxu1 %v2386_v0  ;;  %v2395_v5 = vld [vmem:[%s3522_s1 + $0x40] sm:$0xff]   ;;  %v2392_v8 = vld [vmem:[%s3521_s2 + $0x30] sm:$0xff]   ;;  %v2393_v9 = vld [vmem:[%s3521_s2 + $0x38] sm:$0xff]  }
   0x4   :  { %2228 = vmatprep.subr.bf16.mxu0 %v2387_v1  ;;  %2371 = vmatprep.subr.bf16.mxu1 %v2387_v1  ;;  %v2390_v6 = vld [vmem:[%s3521_s2 + $0x20] sm:$0xff]   ;;  %v2396_v10 = vld [vmem:[%s3522_s1 + $0x8] sm:$0xff]   ;;  %v2398_v12 = vld [vmem:[%s3522_s1 + $0x10] sm:$0xff]  }
   0x5   :  { %2242 = vmatprep.mubr.bf16.mxu0 %v2394_v4  ;;  %2258 = vmatprep.mubr.bf16.mxu1 %v2395_v5  ;;  %v2397_v11 = vld [vmem:[%s3522_s1 + $0x48] sm:$0xff]   ;;  %v2399_v13 = vld [vmem:[%s3522_s1 + $0x50] sm:$0xff]   ;;  %v2400_v14 = vld [vmem:[%s3522_s1 + $0x18] sm:$0xff]  }
   0x6   :  { %v2401_v15 = vld [vmem:[%s3522_s1 + $0x58] sm:$0xff]   ;;  %v2402_v16 = vld [vmem:[%s3522_s1 + $0x20] sm:$0xff]   ;;  %v2404_v18 = vld [vmem:[%s3522_s1 + $0x28] sm:$0xff]  }
   0x7   :  { %2229 = vmatpush3.bf16.msra.mxu0 %v2387_v1  ;;  %2379 = vmatpush3.bf16.msra.mxu1 %v2387_v1  ;;  %v2403_v17 = vld [vmem:[%s3522_s1 + $0x60] sm:$0xff]   ;;  %v2405_v19 = vld [vmem:[%s3522_s1 + $0x68] sm:$0xff]   ;;  %v2406_v20 = vld [vmem:[%s3522_s1 + $0x30] sm:$0xff]  }
   0x8   :  { %2230 = vmatprep.subr.bf16.mxu0 %v2388_v2  ;;  %2372 = vmatprep.subr.bf16.mxu1 %v2388_v2  ;;  %v2407_v21 = vld [vmem:[%s3522_s1 + $0x70] sm:$0xff]   ;;  %v2408_v22 = vld [vmem:[%s3522_s1 + $0x38] sm:$0xff]   ;;  %v2722_v24 = vld [vmem:[%s3523_s0 + $0x4] ss:$8 sps:$4 sm:$0xff]  }
   0x9   :  { %v2409_v23 = vld [vmem:[%s3522_s1 + $0x78] sm:$0xff]  }
   0xb   :  { %2231 = vmatpush3.bf16.msra.mxu0 %v2388_v2  ;;  %2380 = vmatpush3.bf16.msra.mxu1 %v2388_v2 }
   0xc   :  { %2232 = vmatprep.subr.bf16.mxu0 %v2389_v3  ;;  %2373 = vmatprep.subr.bf16.mxu1 %v2389_v3 }
   0xf   :  { %2233 = vmatpush3.bf16.msra.mxu0 %v2389_v3  ;;  %2381 = vmatpush3.bf16.msra.mxu1 %v2389_v3 }
  0x10   :  { %2234 = vmatprep.subr.bf16.mxu0 %v2390_v6  ;;  %2374 = vmatprep.subr.bf16.mxu1 %v2390_v6 }
  0x13   :  { %2235 = vmatpush3.bf16.msra.mxu0 %v2390_v6  ;;  %2382 = vmatpush3.bf16.msra.mxu1 %v2390_v6 }
  0x14   :  { %2236 = vmatprep.subr.bf16.mxu0 %v2391_v7  ;;  %2375 = vmatprep.subr.bf16.mxu1 %v2391_v7 }
  0x17   :  { %2237 = vmatpush3.bf16.msra.mxu0 %v2391_v7  ;;  %2383 = vmatpush3.bf16.msra.mxu1 %v2391_v7 }
  0x18   :  { %2238 = vmatprep.subr.bf16.mxu0 %v2392_v8  ;;  %2376 = vmatprep.subr.bf16.mxu1 %v2392_v8 }
  0x1b   :  { %2239 = vmatpush3.bf16.msra.mxu0 %v2392_v8  ;;  %2384 = vmatpush3.bf16.msra.mxu1 %v2392_v8 }
  0x1c   :  { %2240 = vmatprep.subr.bf16.mxu0 %v2393_v9  ;;  %2377 = vmatprep.subr.bf16.mxu1 %v2393_v9 }
  0x1f   :  { %2241 = vmatpush3.bf16.msra.mxu0 %v2393_v9  ;;  %2385 = vmatpush3.bf16.msra.mxu1 %v2393_v9  ;;  %v2458_v9 = vld [vmem:[%s3524_s4] sm:$0xff]  }
  0x20   :  { %2274 = vmatprep.subr.bf16.mxu0 %v2458_v9 }
  0x22   :  { %2243 = vmatmul.mubr.bf16.vlgmr.msra.gmra.mrb[0].mxu0 %v2396_v10  ;;  %2259 = vmatmul.mubr.bf16.vlgmr.msra.gmra.mrb[0].mxu1 %v2397_v11  ;;  %v2731_v10 = vld [vmem:[%s3523_s0] ss:$8 sps:$4 sm:$0xff]  }
  0x23   :  { %2246 = vmatprep.mubr.bf16.mxu0 %v2398_v12  ;;  %2262 = vmatprep.mubr.bf16.mxu1 %v2399_v13  ;;  %v2459_v11 = vld [vmem:[%s3524_s4 + $0x8] sm:$0xff]   ;;  %v2739_v12 = vld [vmem:[%s3523_s0 + $0x14] ss:$8 sps:$4 sm:$0xff]  }
  0x24   :  { %v2460_v13 = vld [vmem:[%s3524_s4 + $0x10] sm:$0xff]   ;;  %2275 = vmatpush3.bf16.msra.mxu0 %v2458_v9 }
  0x25   :  { %2276 = vmatprep.subr.bf16.mxu0 %v2459_v11 }
  0x28   :  { %2277 = vmatpush3.bf16.msra.mxu0 %v2459_v11 }
  0x29   :  { %2278 = vmatprep.subr.bf16.mxu0 %v2460_v13 }
  0x2a   :  { %2247 = vmatmul.mubr.bf16.gmra.mrb[4].mxu0 %v2400_v14  ;;  %2263 = vmatmul.mubr.bf16.gmra.mrb[4].mxu1 %v2401_v15  ;;  %v2749_v14 = vld [vmem:[%s3523_s0 + $0x10] ss:$8 sps:$4 sm:$0xff]   ;;  %v2754_v15 = vld [vmem:[%s3523_s0 + $0x24] ss:$8 sps:$4 sm:$0xff]  }
  0x2b   :  { %2250 = vmatprep.mubr.bf16.mxu0 %v2402_v16  ;;  %2266 = vmatprep.mubr.bf16.mxu1 %v2403_v17  ;;  %v2761_v16 = vld [vmem:[%s3523_s0 + $0x20] ss:$8 sps:$4 sm:$0xff]   ;;  %v2766_v17 = vld [vmem:[%s3523_s0 + $0x34] ss:$8 sps:$4 sm:$0xff]  }
  0x2c   :  { %2279 = vmatpush3.bf16.msra.mxu0 %v2460_v13 }
  0x32   :  { %2251 = vmatmul.mubr.bf16.gmra.mrb[8].mxu0 %v2404_v18  ;;  %2267 = vmatmul.mubr.bf16.gmra.mrb[8].mxu1 %v2405_v19  ;;  %v2773_v18 = vld [vmem:[%s3523_s0 + $0x30] ss:$8 sps:$4 sm:$0xff]   ;;  %v2778_v19 = vld [vmem:[%s3523_s0 + $0x44] ss:$8 sps:$4 sm:$0xff]  }
  0x33   :  { %2254 = vmatprep.mubr.bf16.mxu0 %v2406_v20  ;;  %2270 = vmatprep.mubr.bf16.mxu1 %v2407_v21  ;;  %v2785_v20 = vld [vmem:[%s3523_s0 + $0x40] ss:$8 sps:$4 sm:$0xff]   ;;  %v2790_v21 = vld [vmem:[%s3523_s0 + $0x54] ss:$8 sps:$4 sm:$0xff]  }
  0x3a   :  { %2255 = vmatmul.mubr.bf16.gmra.mrb[12].mxu0 %v2408_v22  ;;  %2271 = vmatmul.mubr.bf16.gmra.mrb[12].mxu1 %v2409_v23  ;;  %v2797_v22 = vld [vmem:[%s3523_s0 + $0x50] ss:$8 sps:$4 sm:$0xff]   ;;  %v2802_v23 = vld [vmem:[%s3523_s0 + $0x64] ss:$8 sps:$4 sm:$0xff]  }
  0x3b   :  { %630 = vmatprep.mubr.bf16.mxu1 %v2722_v24 }
  0xf5   :  { %v2244_v25 = vpop.f32.mrb[0].mxu0  ;;  %v2260_v26 = vpop.f32.mrb[0].mxu1 }
  0xf6   :  { %v256_v27 = vpop.f32.mrb[1].mxu0  ;;  %v320_v28 = vpop.f32.mrb[1].mxu1 }
  0xf7   :  { %v2245_v29 = vpop.f32.mrb[2].mxu0  ;;  %v2261_v30 = vpop.f32.mrb[2].mxu1 }
  0xf8   :  { %v416_v31 = vpack.c.bf16 %v2245_v29, %v2244_v25  ;;  %v424_v32 = vpack.c.bf16 %v2261_v30, %v2260_v26  ;;  %v259_v33 = vpop.f32.mrb[3].mxu0  ;;  %v323_v34 = vpop.f32.mrb[3].mxu1  ;;  %v2809_v25 = vld [vmem:[%s3523_s0 + $0x60] ss:$8 sps:$4 sm:$0xff]   ;;  %v2814_v26 = vld [vmem:[%s3523_s0 + $0x74] ss:$8 sps:$4 sm:$0xff]  }
  0xf9   :  { %v415_v35 = vpack.c.bf16 %v259_v33, %v256_v27  ;;  %v423_v36 = vpack.c.bf16 %v323_v34, %v320_v28  ;;  %v2821_v27 = vld [vmem:[%s3523_s0 + $0x70] ss:$8 sps:$4 sm:$0xff]   ;;  %v2826_v28 = vld [vmem:[%s3523_s0 + $0x84] ss:$8 sps:$4 sm:$0xff]   ;;  %v2833_v29 = vld [vmem:[%s3523_s0 + $0x80] ss:$8 sps:$4 sm:$0xff]  }
  0xfa   :  { %v2838_v30 = vld [vmem:[%s3523_s0 + $0x94] ss:$8 sps:$4 sm:$0xff]   ;;  %v2857_v33 = vld [vmem:[%s3523_s0 + $0xa0] ss:$8 sps:$4 sm:$0xff]  }
  0xfb   :  { %1954 = vmatprep.subr.bf16.mxu1 %v423_v36  ;;  %v2862_v34 = vld [vmem:[%s3523_s0 + $0xb4] ss:$8 sps:$4 sm:$0xff]   ;;  %v2872_v36 = vld [vmem:[%s3523_s0 + $0xb0] ss:$8 sps:$4 sm:$0xff]  }
  0xfc   :  { %1955 = vmatpush3.bf16.msra.mxu1 %v415_v35  ;;  %v2461_v35 = vld [vmem:[%s3524_s4 + $0x18] sm:$0xff]  }
  0xfd   :  { %v2248_v37 = vpop.f32.mrb[4].mxu0  ;;  %v2264_v38 = vpop.f32.mrb[4].mxu1  ;;  %1956 = vmatprep.subr.bf16.mxu1 %v424_v32  ;;  %v2850_v32 = vld [vmem:[%s3523_s0 + $0xa4] ss:$8 sps:$4 sm:$0xff]   ;;  %2280 = vmatprep.subr.bf16.mxu0 %v2461_v35 }
  0xfe   :  { %v272_v39 = vpop.f32.mrb[5].mxu0  ;;  %v336_v40 = vpop.f32.mrb[5].mxu1  ;;  %2281 = vmatpush3.bf16.msra.mxu0 %v2461_v35 }
  0xff   :  { %v2249_v41 = vpop.f32.mrb[6].mxu0  ;;  %v2265_v42 = vpop.f32.mrb[6].mxu1 }
 0x100   :  { %v418_v43 = vpack.c.bf16 %v2249_v41, %v2248_v37  ;;  %v426_v44 = vpack.c.bf16 %v2265_v42, %v2264_v38  ;;  %v275_v45 = vpop.f32.mrb[7].mxu0  ;;  %v339_v46 = vpop.f32.mrb[7].mxu1  ;;  %1957 = vmatpush3.bf16.msra.mxu1 %v416_v31  ;;  %v2845_v31 = vld [vmem:[%s3523_s0 + $0x90] ss:$8 sps:$4 sm:$0xff]   ;;  %v2877_v37 = vld [vmem:[%s3523_s0 + $0xc4] ss:$8 sps:$4 sm:$0xff]  }
 0x101   :  { %v417_v47 = vpack.c.bf16 %v275_v45, %v272_v39  ;;  %v425_v48 = vpack.c.bf16 %v339_v46, %v336_v40  ;;  %v2462_v38 = vld [vmem:[%s3524_s4 + $0x20] sm:$0xff]   ;;  %v2463_v39 = vld [vmem:[%s3524_s4 + $0x28] sm:$0xff]   ;;  %v2895_v41 = vld [vmem:[%s3523_s0 + $0xd4] ss:$8 sps:$4 sm:$0xff]  }
 0x102   :  { %2282 = vmatprep.subr.bf16.mxu0 %v2462_v38  ;;  %v2890_v40 = vld [vmem:[%s3523_s0 + $0xc0] ss:$8 sps:$4 sm:$0xff]   ;;  %v2464_v42 = vld [vmem:[%s3524_s4 + $0x30] sm:$0xff]   ;;  %v2913_v45 = vld [vmem:[%s3523_s0 + $0xe4] ss:$8 sps:$4 sm:$0xff]  }
 0x103   :  { %1958 = vmatprep.subr.bf16.mxu1 %v425_v48  ;;  %2283 = vmatpush3.bf16.msra.mxu0 %v2462_v38  ;;  %v2920_v46 = vld [vmem:[%s3523_s0 + $0xe0] ss:$8 sps:$4 sm:$0xff]   ;;  %v2932_v48 = vld [vmem:[%s3523_s0 + $0xf0] ss:$8 sps:$4 sm:$0xff]  }
 0x104   :  { %1959 = vmatpush3.bf16.msra.mxu1 %v417_v47  ;;  %2284 = vmatprep.subr.bf16.mxu0 %v2463_v39  ;;  %v2925_v47 = vld [vmem:[%s3523_s0 + $0xf4] ss:$8 sps:$4 sm:$0xff]  }
 0x105   :  { %v2252_v49 = vpop.f32.mrb[8].mxu0  ;;  %v2268_v50 = vpop.f32.mrb[8].mxu1  ;;  %1960 = vmatprep.subr.bf16.mxu1 %v426_v44  ;;  %v2908_v44 = vld [vmem:[%s3523_s0 + $0xd0] ss:$8 sps:$4 sm:$0xff]  }
 0x106   :  { %v288_v51 = vpop.f32.mrb[9].mxu0  ;;  %v352_v52 = vpop.f32.mrb[9].mxu1 }
 0x107   :  { %v2253_v53 = vpop.f32.mrb[10].mxu0  ;;  %v2269_v54 = vpop.f32.mrb[10].mxu1  ;;  %2285 = vmatpush3.bf16.msra.mxu0 %v2463_v39 }
 0x108   :  { %v420_v55 = vpack.c.bf16 %v2253_v53, %v2252_v49  ;;  %v428_v56 = vpack.c.bf16 %v2269_v54, %v2268_v50  ;;  %v291_v57 = vpop.f32.mrb[11].mxu0  ;;  %v355_v58 = vpop.f32.mrb[11].mxu1  ;;  %1961 = vmatpush3.bf16.msra.mxu1 %v418_v43  ;;  %2286 = vmatprep.subr.bf16.mxu0 %v2464_v42  ;;  %v2465_v43 = vld [vmem:[%s3524_s4 + $0x38] sm:$0xff]   ;;  %v2938_v50 = vld [vmem:[%s3525_s3] ss:$0 sm:$0xff] }
 0x109   :  { %v419_v59 = vpack.c.bf16 %v291_v57, %v288_v51  ;;  %v427_v60 = vpack.c.bf16 %v355_v58, %v352_v52 }
 0x10b   :  { %1962 = vmatprep.subr.bf16.mxu1 %v427_v60  ;;  %2287 = vmatpush3.bf16.msra.mxu0 %v2464_v42 }
 0x10c   :  { %1963 = vmatpush3.bf16.msra.mxu1 %v419_v59  ;;  %2288 = vmatprep.subr.bf16.mxu0 %v2465_v43 }
 0x10d   :  { %v2256_v61 = vpop.f32.mrb[12].mxu0  ;;  %v2272_v62 = vpop.f32.mrb[12].mxu1  ;;  %1964 = vmatprep.subr.bf16.mxu1 %v428_v56 }
 0x10e   :  { %v304_v63 = vpop.f32.mrb[13].mxu0  ;;  %v368_v0 = vpop.f32.mrb[13].mxu1 }
 0x10f   :  { %v2257_v1 = vpop.f32.mrb[14].mxu0  ;;  %v2273_v2 = vpop.f32.mrb[14].mxu1  ;;  %2289 = vmatpush3.bf16.msra.mxu0 %v2465_v43 }
 0x110   :  { %v422_v3 = vpack.c.bf16 %v2257_v1, %v2256_v61  ;;  %v430_v4 = vpack.c.bf16 %v2273_v2, %v2272_v62  ;;  %v307_v5 = vpop.f32.mrb[15].mxu0  ;;  %v371_v6 = vpop.f32.mrb[15].mxu1  ;;  %1965 = vmatpush3.bf16.msra.mxu1 %v420_v55 }
 0x111   :  { %v421_v7 = vpack.c.bf16 %v307_v5, %v304_v63  ;;  %v429_v8 = vpack.c.bf16 %v371_v6, %v368_v0 }
 0x113   :  { %1966 = vmatprep.subr.bf16.mxu1 %v429_v8 }
 0x114   :  { %1967 = vmatpush3.bf16.msra.mxu1 %v421_v7 }
 0x115   :  { %1968 = vmatprep.subr.bf16.mxu1 %v430_v4 }
 0x118   :  { %1969 = vmatpush3.bf16.msra.mxu1 %v422_v3 }
 0x11b   :  { %631 = vmatmul.mubr.bf16.vlgmr.msra.gmra.mrb[16].mxu1 %v2731_v10 }
 0x11c   :  { %638 = vmatprep.mubr.bf16.mxu1 %v2739_v12 }
 0x123   :  { %639 = vmatmul.mubr.bf16.gmra.mrb[20].mxu1 %v2749_v14 }
 0x124   :  { %646 = vmatprep.mubr.bf16.mxu1 %v2754_v15 }
 0x12b   :  { %647 = vmatmul.mubr.bf16.gmra.mrb[24].mxu1 %v2761_v16 }
 0x12c   :  { %654 = vmatprep.mubr.bf16.mxu1 %v2766_v17 }
 0x133   :  { %655 = vmatmul.mubr.bf16.gmra.mrb[28].mxu1 %v2773_v18 }
 0x134   :  { %662 = vmatprep.mubr.bf16.mxu1 %v2778_v19 }
 0x13b   :  { %663 = vmatmul.mubr.bf16.gmra.mrb[32].mxu1 %v2785_v20 }
 0x13c   :  { %670 = vmatprep.mubr.bf16.mxu1 %v2790_v21 }
 0x143   :  { %671 = vmatmul.mubr.bf16.gmra.mrb[36].mxu1 %v2797_v22 }
 0x144   :  { %678 = vmatprep.mubr.bf16.mxu1 %v2802_v23 }
 0x14b   :  { %679 = vmatmul.mubr.bf16.gmra.mrb[40].mxu1 %v2809_v25 }
 0x14c   :  { %686 = vmatprep.mubr.bf16.mxu1 %v2814_v26 }
 0x153   :  { %687 = vmatmul.mubr.bf16.gmra.mrb[44].mxu1 %v2821_v27 }
 0x154   :  { %694 = vmatprep.mubr.bf16.mxu1 %v2826_v28 }
 0x15b   :  { %695 = vmatmul.mubr.bf16.gmra.mrb[48].mxu1 %v2833_v29 }
 0x15c   :  { %702 = vmatprep.mubr.bf16.mxu1 %v2838_v30 }
 0x163   :  { %703 = vmatmul.mubr.bf16.gmra.mrb[52].mxu1 %v2845_v31 }
 0x164   :  { %710 = vmatprep.mubr.bf16.mxu1 %v2850_v32 }
 0x16b   :  { %711 = vmatmul.mubr.bf16.gmra.mrb[56].mxu1 %v2857_v33 }
 0x16c   :  { %718 = vmatprep.mubr.bf16.mxu1 %v2862_v34 }
 0x173   :  { %719 = vmatmul.mubr.bf16.gmra.mrb[60].mxu1 %v2872_v36 }
 0x174   :  { %726 = vmatprep.mubr.bf16.mxu1 %v2877_v37 }
 0x17b   :  { %727 = vmatmul.mubr.bf16.gmra.mrb[64].mxu1 %v2890_v40 }
 0x17c   :  { %734 = vmatprep.mubr.bf16.mxu1 %v2895_v41 }
 0x183   :  { %735 = vmatmul.mubr.bf16.gmra.mrb[68].mxu1 %v2908_v44 }
 0x184   :  { %742 = vmatprep.mubr.bf16.mxu1 %v2913_v45 }
 0x18b   :  { %743 = vmatmul.mubr.bf16.gmra.mrb[72].mxu1 %v2920_v46 }
 0x18c   :  { %750 = vmatprep.mubr.bf16.mxu1 %v2925_v47 }
 0x193   :  { %751 = vmatmul.mubr.bf16.gmra.mrb[76].mxu1 %v2932_v48 }
 0x1ee   :  { %v1970_v49 = vpop.f32.mrb[16].mxu1 }
 0x1ef   :  { %v1971_v51 = vpop.f32.mrb[17].mxu1 }
 0x1f0   :  { %v1972_v52 = vadd.f32 %v1971_v51, %v1970_v49  ;;  %v1973_v53 = vpop.f32.mrb[18].mxu1 }
 0x1f1   :  { %v1974_v54 = vpop.f32.mrb[19].mxu1 }
 0x1f2   :  { %v633_v55 = vadd.f32 %v1972_v52, %v2938_v50  ;;  %v1975_v56 = vadd.f32 %v1974_v54, %v1973_v53 }
 0x1f4   :  { %v636_v57 = vadd.f32 %v1975_v56, %v2938_v50  ;;  %v759_v58 = vmax.f32 %v633_v55, 0.0 }
 0x1f6   :  { %v760_v59 = vmax.f32 %v636_v57, 0.0  ;;  %v1976_v60 = vpop.f32.mrb[20].mxu1 }
 0x1f7   :  { %v1977_v61 = vpop.f32.mrb[21].mxu1 }
 0x1f8   :  { %v1978_v62 = vadd.f32 %v1977_v61, %v1976_v60  ;;  %v1979_v63 = vpop.f32.mrb[22].mxu1  ;;  %v791_v0 = vpack.c.bf16 %v760_v59, %v759_v58 }
 0x1f9   :  { %v1980_v1 = vpop.f32.mrb[23].mxu1 }
 0x1fa   :  { %v641_v2 = vadd.f32 %v1978_v62, %v2938_v50  ;;  %v1981_v3 = vadd.f32 %v1980_v1, %v1979_v63  ;;  %2290 = vmatprep.mubr.bf16.mxu0 %v791_v0 }
 0x1fc   :  { %v644_v4 = vadd.f32 %v1981_v3, %v2938_v50  ;;  %v761_v5 = vmax.f32 %v641_v2, 0.0 }
 0x1fe   :  { %v762_v6 = vmax.f32 %v644_v4, 0.0  ;;  %v1982_v7 = vpop.f32.mrb[24].mxu1 }
 0x1ff   :  { %v1983_v8 = vpop.f32.mrb[25].mxu1 }
 0x200   :  { %v792_v9 = vpack.c.bf16 %v762_v6, %v761_v5  ;;  %v1984_v11 = vadd.f32 %v1983_v8, %v1982_v7  ;;  %v1985_v13 = vpop.f32.mrb[26].mxu1 }
 0x201   :  { %v1986_v35 = vpop.f32.mrb[27].mxu1 }
 0x202   :  { %v649_v38 = vadd.f32 %v1984_v11, %v2938_v50  ;;  %v1987_v39 = vadd.f32 %v1986_v35, %v1985_v13  ;;  %2291 = vmatmul.mubr.bf16.vlgmr.msra.gmra.mrb[16].mxu0 %v792_v9 }
 0x204   :  { %v652_v42 = vadd.f32 %v1987_v39, %v2938_v50  ;;  %v763_v43 = vmax.f32 %v649_v38, 0.0 }
 0x206   :  { %v764_v49 = vmax.f32 %v652_v42, 0.0  ;;  %v1988_v51 = vpop.f32.mrb[28].mxu1 }
 0x207   :  { %v1989_v52 = vpop.f32.mrb[29].mxu1 }
 0x208   :  { %v1990_v53 = vadd.f32 %v1989_v52, %v1988_v51  ;;  %v1991_v54 = vpop.f32.mrb[30].mxu1  ;;  %v793_v55 = vpack.c.bf16 %v764_v49, %v763_v43 }
 0x209   :  { %v1992_v56 = vpop.f32.mrb[31].mxu1 }
 0x20a   :  { %v657_v57 = vadd.f32 %v1990_v53, %v2938_v50  ;;  %v1993_v58 = vadd.f32 %v1992_v56, %v1991_v54  ;;  %2294 = vmatprep.mubr.bf16.mxu0 %v793_v55 }
 0x20c   :  { %v660_v59 = vadd.f32 %v1993_v58, %v2938_v50  ;;  %v765_v60 = vmax.f32 %v657_v57, 0.0 }
 0x20e   :  { %v766_v61 = vmax.f32 %v660_v59, 0.0  ;;  %v1994_v62 = vpop.f32.mrb[32].mxu1 }
 0x20f   :  { %v1995_v63 = vpop.f32.mrb[33].mxu1 }
 0x210   :  { %v1996_v0 = vadd.f32 %v1995_v63, %v1994_v62  ;;  %v1997_v1 = vpop.f32.mrb[34].mxu1  ;;  %v794_v2 = vpack.c.bf16 %v766_v61, %v765_v60 }
 0x211   :  { %v1998_v3 = vpop.f32.mrb[35].mxu1 }
 0x212   :  { %v665_v4 = vadd.f32 %v1996_v0, %v2938_v50  ;;  %v1999_v5 = vadd.f32 %v1998_v3, %v1997_v1  ;;  %2295 = vmatmul.mubr.bf16.gmra.mrb[20].mxu0 %v794_v2 }
 0x214   :  { %v668_v6 = vadd.f32 %v1999_v5, %v2938_v50  ;;  %v767_v7 = vmax.f32 %v665_v4, 0.0 }
 0x216   :  { %v768_v8 = vmax.f32 %v668_v6, 0.0  ;;  %v2000_v9 = vpop.f32.mrb[36].mxu1 }
 0x217   :  { %v2001_v11 = vpop.f32.mrb[37].mxu1 }
 0x218   :  { %v2002_v13 = vadd.f32 %v2001_v11, %v2000_v9  ;;  %v2003_v35 = vpop.f32.mrb[38].mxu1  ;;  %v795_v38 = vpack.c.bf16 %v768_v8, %v767_v7 }
 0x219   :  { %v2004_v39 = vpop.f32.mrb[39].mxu1 }
 0x21a   :  { %v673_v42 = vadd.f32 %v2002_v13, %v2938_v50  ;;  %v2005_v43 = vadd.f32 %v2004_v39, %v2003_v35  ;;  %2298 = vmatprep.mubr.bf16.mxu0 %v795_v38 }
 0x21c   :  { %v676_v49 = vadd.f32 %v2005_v43, %v2938_v50  ;;  %v769_v51 = vmax.f32 %v673_v42, 0.0 }
 0x21e   :  { %v770_v52 = vmax.f32 %v676_v49, 0.0  ;;  %v2006_v53 = vpop.f32.mrb[40].mxu1 }
 0x21f   :  { %v2007_v54 = vpop.f32.mrb[41].mxu1 }
 0x220   :  { %v2008_v55 = vadd.f32 %v2007_v54, %v2006_v53  ;;  %v2009_v56 = vpop.f32.mrb[42].mxu1  ;;  %v796_v57 = vpack.c.bf16 %v770_v52, %v769_v51 }
 0x221   :  { %v2010_v58 = vpop.f32.mrb[43].mxu1 }
 0x222   :  { %v681_v59 = vadd.f32 %v2008_v55, %v2938_v50  ;;  %v2011_v60 = vadd.f32 %v2010_v58, %v2009_v56  ;;  %2299 = vmatmul.mubr.bf16.gmra.mrb[24].mxu0 %v796_v57 }
 0x224   :  { %v684_v61 = vadd.f32 %v2011_v60, %v2938_v50  ;;  %v771_v62 = vmax.f32 %v681_v59, 0.0 }
 0x226   :  { %v772_v63 = vmax.f32 %v684_v61, 0.0  ;;  %v2012_v0 = vpop.f32.mrb[44].mxu1 }
 0x227   :  { %v2013_v1 = vpop.f32.mrb[45].mxu1 }
 0x228   :  { %v2014_v2 = vadd.f32 %v2013_v1, %v2012_v0  ;;  %v2015_v3 = vpop.f32.mrb[46].mxu1  ;;  %v797_v4 = vpack.c.bf16 %v772_v63, %v771_v62 }
 0x229   :  { %v2016_v5 = vpop.f32.mrb[47].mxu1 }
 0x22a   :  { %v689_v6 = vadd.f32 %v2014_v2, %v2938_v50  ;;  %v2017_v7 = vadd.f32 %v2016_v5, %v2015_v3  ;;  %2302 = vmatprep.mubr.bf16.mxu0 %v797_v4 }
 0x22c   :  { %v692_v8 = vadd.f32 %v2017_v7, %v2938_v50  ;;  %v773_v9 = vmax.f32 %v689_v6, 0.0 }
 0x22e   :  { %v774_v11 = vmax.f32 %v692_v8, 0.0  ;;  %v2018_v13 = vpop.f32.mrb[48].mxu1 }
 0x22f   :  { %v2019_v35 = vpop.f32.mrb[49].mxu1 }
 0x230   :  { %v2020_v38 = vadd.f32 %v2019_v35, %v2018_v13  ;;  %v2021_v39 = vpop.f32.mrb[50].mxu1  ;;  %v798_v42 = vpack.c.bf16 %v774_v11, %v773_v9 }
 0x231   :  { %v2022_v43 = vpop.f32.mrb[51].mxu1 }
 0x232   :  { %v697_v49 = vadd.f32 %v2020_v38, %v2938_v50  ;;  %v2023_v51 = vadd.f32 %v2022_v43, %v2021_v39  ;;  %2303 = vmatmul.mubr.bf16.gmra.mrb[28].mxu0 %v798_v42 }
 0x234   :  { %v700_v52 = vadd.f32 %v2023_v51, %v2938_v50  ;;  %v775_v53 = vmax.f32 %v697_v49, 0.0 }
 0x236   :  { %v776_v54 = vmax.f32 %v700_v52, 0.0  ;;  %v2024_v55 = vpop.f32.mrb[52].mxu1 }
 0x237   :  { %v2025_v56 = vpop.f32.mrb[53].mxu1 }
 0x238   :  { %v2026_v57 = vadd.f32 %v2025_v56, %v2024_v55  ;;  %v2027_v58 = vpop.f32.mrb[54].mxu1  ;;  %v799_v59 = vpack.c.bf16 %v776_v54, %v775_v53 }
 0x239   :  { %v2028_v60 = vpop.f32.mrb[55].mxu1 }
 0x23a   :  { %v705_v61 = vadd.f32 %v2026_v57, %v2938_v50  ;;  %v2029_v62 = vadd.f32 %v2028_v60, %v2027_v58  ;;  %2306 = vmatprep.mubr.bf16.mxu0 %v799_v59 }
 0x23c   :  { %v708_v63 = vadd.f32 %v2029_v62, %v2938_v50  ;;  %v777_v0 = vmax.f32 %v705_v61, 0.0 }
 0x23e   :  { %v778_v1 = vmax.f32 %v708_v63, 0.0  ;;  %v2030_v2 = vpop.f32.mrb[56].mxu1 }
 0x23f   :  { %v2031_v3 = vpop.f32.mrb[57].mxu1 }
 0x240   :  { %v2032_v4 = vadd.f32 %v2031_v3, %v2030_v2  ;;  %v2033_v5 = vpop.f32.mrb[58].mxu1  ;;  %v800_v6 = vpack.c.bf16 %v778_v1, %v777_v0 }
 0x241   :  { %v2034_v7 = vpop.f32.mrb[59].mxu1 }
 0x242   :  { %v713_v8 = vadd.f32 %v2032_v4, %v2938_v50  ;;  %v2035_v9 = vadd.f32 %v2034_v7, %v2033_v5  ;;  %2307 = vmatmul.mubr.bf16.gmra.mrb[32].mxu0 %v800_v6 }
 0x244   :  { %v716_v11 = vadd.f32 %v2035_v9, %v2938_v50  ;;  %v779_v13 = vmax.f32 %v713_v8, 0.0 }
 0x246   :  { %v780_v35 = vmax.f32 %v716_v11, 0.0  ;;  %v2036_v38 = vpop.f32.mrb[60].mxu1 }
 0x247   :  { %v2037_v39 = vpop.f32.mrb[61].mxu1 }
 0x248   :  { %v2038_v42 = vadd.f32 %v2037_v39, %v2036_v38  ;;  %v2039_v43 = vpop.f32.mrb[62].mxu1  ;;  %v801_v49 = vpack.c.bf16 %v780_v35, %v779_v13 }
 0x249   :  { %v2040_v51 = vpop.f32.mrb[63].mxu1 }
 0x24a   :  { %v721_v52 = vadd.f32 %v2038_v42, %v2938_v50  ;;  %v2041_v53 = vadd.f32 %v2040_v51, %v2039_v43  ;;  %2310 = vmatprep.mubr.bf16.mxu0 %v801_v49 }
 0x24c   :  { %v724_v54 = vadd.f32 %v2041_v53, %v2938_v50  ;;  %v781_v55 = vmax.f32 %v721_v52, 0.0 }
 0x24e   :  { %v782_v56 = vmax.f32 %v724_v54, 0.0  ;;  %v2042_v57 = vpop.f32.mrb[64].mxu1 }
 0x24f   :  { %v2043_v58 = vpop.f32.mrb[65].mxu1 }
 0x250   :  { %v2044_v59 = vadd.f32 %v2043_v58, %v2042_v57  ;;  %v2045_v60 = vpop.f32.mrb[66].mxu1  ;;  %v802_v61 = vpack.c.bf16 %v782_v56, %v781_v55 }
 0x251   :  { %v2046_v62 = vpop.f32.mrb[67].mxu1 }
 0x252   :  { %v729_v63 = vadd.f32 %v2044_v59, %v2938_v50  ;;  %v2047_v0 = vadd.f32 %v2046_v62, %v2045_v60  ;;  %2311 = vmatmul.mubr.bf16.gmra.mrb[36].mxu0 %v802_v61 }
 0x254   :  { %v732_v1 = vadd.f32 %v2047_v0, %v2938_v50  ;;  %v783_v2 = vmax.f32 %v729_v63, 0.0 }
 0x256   :  { %v784_v3 = vmax.f32 %v732_v1, 0.0  ;;  %v2048_v4 = vpop.f32.mrb[68].mxu1 }
 0x257   :  { %v2049_v5 = vpop.f32.mrb[69].mxu1 }
 0x258   :  { %v2050_v6 = vadd.f32 %v2049_v5, %v2048_v4  ;;  %v2051_v7 = vpop.f32.mrb[70].mxu1  ;;  %v803_v8 = vpack.c.bf16 %v784_v3, %v783_v2 }
 0x259   :  { %v2052_v9 = vpop.f32.mrb[71].mxu1 }
 0x25a   :  { %v737_v11 = vadd.f32 %v2050_v6, %v2938_v50  ;;  %v2053_v13 = vadd.f32 %v2052_v9, %v2051_v7  ;;  %2314 = vmatprep.mubr.bf16.mxu0 %v803_v8 }
 0x25c   :  { %v740_v35 = vadd.f32 %v2053_v13, %v2938_v50  ;;  %v785_v38 = vmax.f32 %v737_v11, 0.0 }
 0x25e   :  { %v786_v39 = vmax.f32 %v740_v35, 0.0  ;;  %v2054_v42 = vpop.f32.mrb[72].mxu1 }
 0x25f   :  { %v2055_v43 = vpop.f32.mrb[73].mxu1 }
 0x260   :  { %v2056_v49 = vadd.f32 %v2055_v43, %v2054_v42  ;;  %v2057_v51 = vpop.f32.mrb[74].mxu1  ;;  %v804_v52 = vpack.c.bf16 %v786_v39, %v785_v38 }
 0x261   :  { %v2058_v53 = vpop.f32.mrb[75].mxu1 }
 0x262   :  { %v745_v54 = vadd.f32 %v2056_v49, %v2938_v50  ;;  %v2059_v55 = vadd.f32 %v2058_v53, %v2057_v51  ;;  %2315 = vmatmul.mubr.bf16.gmra.mrb[40].mxu0 %v804_v52 }
 0x264   :  { %v748_v56 = vadd.f32 %v2059_v55, %v2938_v50  ;;  %v787_v57 = vmax.f32 %v745_v54, 0.0 }
 0x266   :  { %v788_v58 = vmax.f32 %v748_v56, 0.0  ;;  %v2060_v59 = vpop.f32.mrb[76].mxu1 }
 0x267   :  { %v2061_v60 = vpop.f32.mrb[77].mxu1 }
 0x268   :  { %v2062_v61 = vadd.f32 %v2061_v60, %v2060_v59  ;;  %v2063_v62 = vpop.f32.mrb[78].mxu1  ;;  %v805_v63 = vpack.c.bf16 %v788_v58, %v787_v57 }
 0x269   :  { %v2064_v0 = vpop.f32.mrb[79].mxu1 }
 0x26a   :  { %v753_v1 = vadd.f32 %v2062_v61, %v2938_v50  ;;  %v2065_v2 = vadd.f32 %v2064_v0, %v2063_v62  ;;  %2318 = vmatprep.mubr.bf16.mxu0 %v805_v63 }
 0x26c   :  { %v756_v3 = vadd.f32 %v2065_v2, %v2938_v50  ;;  %v789_v4 = vmax.f32 %v753_v1, 0.0 }
 0x26e   :  { %v790_v5 = vmax.f32 %v756_v3, 0.0 }
 0x270   :  { %v806_v6 = vpack.c.bf16 %v790_v5, %v789_v4 }
 0x272   :  { %2319 = vmatmul.mubr.bf16.gmra.mrb[44].mxu0 %v806_v6 }
 0x273   :  { %1087 = vmatprep.mubr.bf16.mxu0 %v2722_v24 }
 0x2d5   :  { %v2292_v7 = vpop.f32.mrb[16].mxu0 }
 0x2d6   :  { %v905_v8 = vpop.f32.mrb[17].mxu0 }
 0x2d7   :  { %v2293_v9 = vpop.f32.mrb[18].mxu0 }
 0x2d8   :  { %v1033_v11 = vpack.c.bf16 %v2293_v9, %v2292_v7  ;;  %v908_v13 = vpop.f32.mrb[19].mxu0 }
 0x2d9   :  { %v1032_v35 = vpack.c.bf16 %v908_v13, %v905_v8 }
 0x2e5   :  { %v2296_v38 = vpop.f32.mrb[20].mxu0 }
 0x2e6   :  { %v921_v39 = vpop.f32.mrb[21].mxu0 }
 0x2e7   :  { %v2297_v42 = vpop.f32.mrb[22].mxu0 }
 0x2e8   :  { %v1035_v43 = vpack.c.bf16 %v2297_v42, %v2296_v38  ;;  %v924_v49 = vpop.f32.mrb[23].mxu0 }
 0x2e9   :  { %v1034_v51 = vpack.c.bf16 %v924_v49, %v921_v39 }
 0x2f5   :  { %v2300_v52 = vpop.f32.mrb[24].mxu0 }
 0x2f6   :  { %v937_v50 = vpop.f32.mrb[25].mxu0 }
 0x2f7   :  { %v2301_v53 = vpop.f32.mrb[26].mxu0 }
 0x2f8   :  { %v1037_v54 = vpack.c.bf16 %v2301_v53, %v2300_v52  ;;  %v940_v55 = vpop.f32.mrb[27].mxu0 }
 0x2f9   :  { %v1036_v56 = vpack.c.bf16 %v940_v55, %v937_v50 }
 0x305   :  { %v2304_v57 = vpop.f32.mrb[28].mxu0 }
 0x306   :  { %v953_v24 = vpop.f32.mrb[29].mxu0 }
 0x307   :  { %v2305_v58 = vpop.f32.mrb[30].mxu0 }
 0x308   :  { %v1039_v59 = vpack.c.bf16 %v2305_v58, %v2304_v57  ;;  %v956_v60 = vpop.f32.mrb[31].mxu0 }
 0x309   :  { %v1038_v61 = vpack.c.bf16 %v956_v60, %v953_v24  ;;  %v2470_v24 = vld [vmem:[%s3526_s6 + $0x20] sm:$0xff]  }
 0x315   :  { %v2308_v62 = vpop.f32.mrb[32].mxu0 }
 0x316   :  { %v969_v63 = vpop.f32.mrb[33].mxu0 }
 0x317   :  { %v2309_v0 = vpop.f32.mrb[34].mxu0 }
 0x318   :  { %v1041_v1 = vpack.c.bf16 %v2309_v0, %v2308_v62  ;;  %v972_v2 = vpop.f32.mrb[35].mxu0 }
 0x319   :  { %v1040_v3 = vpack.c.bf16 %v972_v2, %v969_v63 }
 0x31b   :  { %2090 = vmatprep.subr.bf16.mxu0 %v1040_v3 }
 0x31c   :  { %2091 = vmatpush3.bf16.msra.mxu0 %v1032_v35 }
 0x31d   :  { %2092 = vmatprep.subr.bf16.mxu0 %v1041_v1 }
 0x320   :  { %2093 = vmatpush3.bf16.msra.mxu0 %v1033_v11 }
 0x325   :  { %v2312_v4 = vpop.f32.mrb[36].mxu0 }
 0x326   :  { %v985_v5 = vpop.f32.mrb[37].mxu0 }
 0x327   :  { %v2313_v6 = vpop.f32.mrb[38].mxu0 }
 0x328   :  { %v1043_v7 = vpack.c.bf16 %v2313_v6, %v2312_v4  ;;  %v988_v8 = vpop.f32.mrb[39].mxu0 }
 0x329   :  { %v1042_v9 = vpack.c.bf16 %v988_v8, %v985_v5 }
 0x32b   :  { %2094 = vmatprep.subr.bf16.mxu0 %v1042_v9 }
 0x32c   :  { %2095 = vmatpush3.bf16.msra.mxu0 %v1034_v51  ;;  %v2467_v51 = vld [vmem:[%s3526_s6 + $0x8] sm:$0xff]  }
 0x32d   :  { %2096 = vmatprep.subr.bf16.mxu0 %v1043_v7 }
 0x330   :  { %2097 = vmatpush3.bf16.msra.mxu0 %v1035_v43  ;;  %v2466_v43 = vld [vmem:[%s3526_s6] sm:$0xff]  }
 0x331   :  { %2322 = vmatprep.subr.bf16.mxu1 %v2466_v43 }
 0x332   :  { %2323 = vmatpush3.bf16.msra.mxu1 %v2466_v43 }
 0x333   :  { %2324 = vmatprep.subr.bf16.mxu1 %v2467_v51 }
 0x335   :  { %v2316_v13 = vpop.f32.mrb[40].mxu0 }
 0x336   :  { %v1001_v38 = vpop.f32.mrb[41].mxu0  ;;  %2325 = vmatpush3.bf16.msra.mxu1 %v2467_v51 }
 0x337   :  { %v2317_v39 = vpop.f32.mrb[42].mxu0 }
 0x338   :  { %v1045_v42 = vpack.c.bf16 %v2317_v39, %v2316_v13  ;;  %v1004_v49 = vpop.f32.mrb[43].mxu0 }
 0x339   :  { %v1044_v52 = vpack.c.bf16 %v1004_v49, %v1001_v38 }
 0x33b   :  { %2098 = vmatprep.subr.bf16.mxu0 %v1044_v52 }
 0x33c   :  { %2099 = vmatpush3.bf16.msra.mxu0 %v1036_v56  ;;  %v2469_v56 = vld [vmem:[%s3526_s6 + $0x18] sm:$0xff]  }
 0x33d   :  { %2100 = vmatprep.subr.bf16.mxu0 %v1045_v42 }
 0x340   :  { %2101 = vmatpush3.bf16.msra.mxu0 %v1037_v54  ;;  %v2468_v54 = vld [vmem:[%s3526_s6 + $0x10] sm:$0xff]  }
 0x341   :  { %2326 = vmatprep.subr.bf16.mxu1 %v2468_v54 }
 0x342   :  { %2327 = vmatpush3.bf16.msra.mxu1 %v2468_v54 }
 0x343   :  { %2328 = vmatprep.subr.bf16.mxu1 %v2469_v56 }
 0x345   :  { %v2320_v11 = vpop.f32.mrb[44].mxu0 }
 0x346   :  { %v1017_v35 = vpop.f32.mrb[45].mxu0  ;;  %2329 = vmatpush3.bf16.msra.mxu1 %v2469_v56 }
 0x347   :  { %v2321_v50 = vpop.f32.mrb[46].mxu0  ;;  %2330 = vmatprep.subr.bf16.mxu1 %v2470_v24 }
 0x348   :  { %v1047_v53 = vpack.c.bf16 %v2321_v50, %v2320_v11  ;;  %v1020_v55 = vpop.f32.mrb[47].mxu0 }
 0x349   :  { %v1046_v57 = vpack.c.bf16 %v1020_v55, %v1017_v35 }
 0x34a   :  { %2331 = vmatpush3.bf16.msra.mxu1 %v2470_v24 }
 0x34b   :  { %2102 = vmatprep.subr.bf16.mxu0 %v1046_v57 }
 0x34c   :  { %2103 = vmatpush3.bf16.msra.mxu0 %v1038_v61 }
 0x34d   :  { %2104 = vmatprep.subr.bf16.mxu0 %v1047_v53 }
 0x350   :  { %2105 = vmatpush3.bf16.msra.mxu0 %v1039_v59 }
 0x353   :  { %1088 = vmatmul.mubr.bf16.vlgmr.msra.gmra.mrb[48].mxu0 %v2731_v10  ;;  %v2471_v10 = vld [vmem:[%s3526_s6 + $0x28] sm:$0xff]  }
 0x354   :  { %1095 = vmatprep.mubr.bf16.mxu0 %v2739_v12  ;;  %2332 = vmatprep.subr.bf16.mxu1 %v2471_v10  ;;  %v2472_v12 = vld [vmem:[%s3526_s6 + $0x30] sm:$0xff]  }
 0x355   :  { %2333 = vmatpush3.bf16.msra.mxu1 %v2471_v10 }
 0x356   :  { %2334 = vmatprep.subr.bf16.mxu1 %v2472_v12 }
 0x359   :  { %2335 = vmatpush3.bf16.msra.mxu1 %v2472_v12 }
 0x35b   :  { %1096 = vmatmul.mubr.bf16.gmra.mrb[52].mxu0 %v2749_v14  ;;  %v2473_v14 = vld [vmem:[%s3526_s6 + $0x38] sm:$0xff]  }
 0x35c   :  { %1103 = vmatprep.mubr.bf16.mxu0 %v2754_v15  ;;  %2336 = vmatprep.subr.bf16.mxu1 %v2473_v14 }
 0x35d   :  { %2337 = vmatpush3.bf16.msra.mxu1 %v2473_v14 }
 0x363   :  { %1104 = vmatmul.mubr.bf16.gmra.mrb[56].mxu0 %v2761_v16 }
 0x364   :  { %1111 = vmatprep.mubr.bf16.mxu0 %v2766_v17 }
 0x36b   :  { %1112 = vmatmul.mubr.bf16.gmra.mrb[60].mxu0 %v2773_v18 }
 0x36c   :  { %1119 = vmatprep.mubr.bf16.mxu0 %v2778_v19  ;;  %v3031_v19 = vld [vmem:[%s3527_s5] ss:$0 sm:$0xff] }
 0x373   :  { %1120 = vmatmul.mubr.bf16.gmra.mrb[64].mxu0 %v2785_v20 }
 0x374   :  { %1127 = vmatprep.mubr.bf16.mxu0 %v2790_v21 }
 0x37b   :  { %1128 = vmatmul.mubr.bf16.gmra.mrb[68].mxu0 %v2797_v22 }
 0x37c   :  { %1135 = vmatprep.mubr.bf16.mxu0 %v2802_v23 }
 0x383   :  { %1136 = vmatmul.mubr.bf16.gmra.mrb[72].mxu0 %v2809_v25 }
 0x384   :  { %1143 = vmatprep.mubr.bf16.mxu0 %v2814_v26 }
 0x38b   :  { %1144 = vmatmul.mubr.bf16.gmra.mrb[76].mxu0 %v2821_v27 }
 0x38c   :  { %1151 = vmatprep.mubr.bf16.mxu0 %v2826_v28 }
 0x393   :  { %1152 = vmatmul.mubr.bf16.gmra.mrb[80].mxu0 %v2833_v29 }
 0x394   :  { %1159 = vmatprep.mubr.bf16.mxu0 %v2838_v30 }
 0x39b   :  { %1160 = vmatmul.mubr.bf16.gmra.mrb[84].mxu0 %v2845_v31 }
 0x39c   :  { %1167 = vmatprep.mubr.bf16.mxu0 %v2850_v32 }
 0x3a3   :  { %1168 = vmatmul.mubr.bf16.gmra.mrb[88].mxu0 %v2857_v33 }
 0x3a4   :  { %1175 = vmatprep.mubr.bf16.mxu0 %v2862_v34 }
 0x3ab   :  { %1176 = vmatmul.mubr.bf16.gmra.mrb[92].mxu0 %v2872_v36 }
 0x3ac   :  { %1183 = vmatprep.mubr.bf16.mxu0 %v2877_v37 }
 0x3b3   :  { %1184 = vmatmul.mubr.bf16.gmra.mrb[96].mxu0 %v2890_v40 }
 0x3b4   :  { %1191 = vmatprep.mubr.bf16.mxu0 %v2895_v41 }
 0x3bb   :  { %1192 = vmatmul.mubr.bf16.gmra.mrb[100].mxu0 %v2908_v44 }
 0x3bc   :  { %1199 = vmatprep.mubr.bf16.mxu0 %v2913_v45 }
 0x3c3   :  { %1200 = vmatmul.mubr.bf16.gmra.mrb[104].mxu0 %v2920_v46 }
 0x3c4   :  { %1207 = vmatprep.mubr.bf16.mxu0 %v2925_v47 }
 0x3cb   :  { %1208 = vmatmul.mubr.bf16.gmra.mrb[108].mxu0 %v2932_v48 }
 0x426   :  { %v2106_v15 = vpop.f32.mrb[48].mxu0 }
 0x427   :  { %v2107_v16 = vpop.f32.mrb[49].mxu0 }
 0x428   :  { %v2108_v17 = vadd.f32 %v2107_v16, %v2106_v15  ;;  %v2109_v18 = vpop.f32.mrb[50].mxu0 }
 0x429   :  { %v2110_v20 = vpop.f32.mrb[51].mxu0 }
 0x42a   :  { %v2111_v21 = vadd.f32 %v2110_v20, %v2109_v18  ;;  %v1090_v22 = vadd.f32 %v2108_v17, %v3031_v19 }
 0x42c   :  { %v1093_v23 = vadd.f32 %v2111_v21, %v3031_v19 }
 0x42e   :  { %v2112_v25 = vpop.f32.mrb[52].mxu0  ;;  %v1216_v26 = vpack.c.bf16 %v1093_v23, %v1090_v22 }
 0x42f   :  { %v2113_v27 = vpop.f32.mrb[53].mxu0 }
 0x430   :  { %v2114_v28 = vadd.f32 %v2113_v27, %v2112_v25  ;;  %v2115_v29 = vpop.f32.mrb[54].mxu0  ;;  %2338 = vmatprep.mubr.bf16.mxu1 %v1216_v26 }
 0x431   :  { %v2116_v30 = vpop.f32.mrb[55].mxu0 }
 0x432   :  { %v2117_v31 = vadd.f32 %v2116_v30, %v2115_v29  ;;  %v1098_v32 = vadd.f32 %v2114_v28, %v3031_v19 }
 0x434   :  { %v1101_v33 = vadd.f32 %v2117_v31, %v3031_v19 }
 0x436   :  { %v1217_v34 = vpack.c.bf16 %v1101_v33, %v1098_v32  ;;  %v2118_v36 = vpop.f32.mrb[56].mxu0 }
 0x437   :  { %v2119_v37 = vpop.f32.mrb[57].mxu0 }
 0x438   :  { %2339 = vmatmul.mubr.bf16.vlgmr.msra.gmra.mrb[80].mxu1 %v1217_v34  ;;  %v2120_v40 = vadd.f32 %v2119_v37, %v2118_v36  ;;  %v2121_v41 = vpop.f32.mrb[58].mxu0 }
 0x439   :  { %v2122_v44 = vpop.f32.mrb[59].mxu0 }
 0x43a   :  { %v2123_v45 = vadd.f32 %v2122_v44, %v2121_v41  ;;  %v1106_v46 = vadd.f32 %v2120_v40, %v3031_v19 }
 0x43c   :  { %v1109_v47 = vadd.f32 %v2123_v45, %v3031_v19 }
 0x43e   :  { %v2124_v48 = vpop.f32.mrb[60].mxu0  ;;  %v1218_v58 = vpack.c.bf16 %v1109_v47, %v1106_v46 }
 0x43f   :  { %v2125_v59 = vpop.f32.mrb[61].mxu0 }
 0x440   :  { %v2126_v60 = vadd.f32 %v2125_v59, %v2124_v48  ;;  %v2127_v61 = vpop.f32.mrb[62].mxu0  ;;  %2342 = vmatprep.mubr.bf16.mxu1 %v1218_v58 }
 0x441   :  { %v2128_v62 = vpop.f32.mrb[63].mxu0 }
 0x442   :  { %v2129_v63 = vadd.f32 %v2128_v62, %v2127_v61  ;;  %v1114_v0 = vadd.f32 %v2126_v60, %v3031_v19 }
 0x444   :  { %v1117_v1 = vadd.f32 %v2129_v63, %v3031_v19 }
 0x446   :  { %v1219_v2 = vpack.c.bf16 %v1117_v1, %v1114_v0  ;;  %v2130_v3 = vpop.f32.mrb[64].mxu0 }
 0x447   :  { %v2131_v4 = vpop.f32.mrb[65].mxu0 }
 0x448   :  { %2343 = vmatmul.mubr.bf16.gmra.mrb[84].mxu1 %v1219_v2  ;;  %v2132_v5 = vadd.f32 %v2131_v4, %v2130_v3  ;;  %v2133_v6 = vpop.f32.mrb[66].mxu0 }
 0x449   :  { %v2134_v7 = vpop.f32.mrb[67].mxu0 }
 0x44a   :  { %v2135_v8 = vadd.f32 %v2134_v7, %v2133_v6  ;;  %v1122_v9 = vadd.f32 %v2132_v5, %v3031_v19 }
 0x44c   :  { %v1125_v13 = vadd.f32 %v2135_v8, %v3031_v19 }
 0x44e   :  { %v2136_v38 = vpop.f32.mrb[68].mxu0  ;;  %v1220_v39 = vpack.c.bf16 %v1125_v13, %v1122_v9 }
 0x44f   :  { %v2137_v42 = vpop.f32.mrb[69].mxu0 }
 0x450   :  { %v2138_v49 = vadd.f32 %v2137_v42, %v2136_v38  ;;  %v2139_v52 = vpop.f32.mrb[70].mxu0  ;;  %2346 = vmatprep.mubr.bf16.mxu1 %v1220_v39 }
 0x451   :  { %v2140_v11 = vpop.f32.mrb[71].mxu0 }
 0x452   :  { %v2141_v35 = vadd.f32 %v2140_v11, %v2139_v52  ;;  %v1130_v50 = vadd.f32 %v2138_v49, %v3031_v19 }
 0x454   :  { %v1133_v53 = vadd.f32 %v2141_v35, %v3031_v19 }
 0x456   :  { %v1221_v55 = vpack.c.bf16 %v1133_v53, %v1130_v50  ;;  %v2142_v57 = vpop.f32.mrb[72].mxu0 }
 0x457   :  { %v2143_v43 = vpop.f32.mrb[73].mxu0 }
 0x458   :  { %2347 = vmatmul.mubr.bf16.gmra.mrb[88].mxu1 %v1221_v55  ;;  %v2144_v51 = vadd.f32 %v2143_v43, %v2142_v57  ;;  %v2145_v54 = vpop.f32.mrb[74].mxu0 }
 0x459   :  { %v2146_v56 = vpop.f32.mrb[75].mxu0 }
 0x45a   :  { %v2147_v24 = vadd.f32 %v2146_v56, %v2145_v54  ;;  %v1138_v10 = vadd.f32 %v2144_v51, %v3031_v19 }
 0x45c   :  { %v1141_v12 = vadd.f32 %v2147_v24, %v3031_v19 }
 0x45e   :  { %v2148_v14 = vpop.f32.mrb[76].mxu0  ;;  %v1222_v15 = vpack.c.bf16 %v1141_v12, %v1138_v10 }
 0x45f   :  { %v2149_v16 = vpop.f32.mrb[77].mxu0 }
 0x460   :  { %v2150_v17 = vadd.f32 %v2149_v16, %v2148_v14  ;;  %v2151_v18 = vpop.f32.mrb[78].mxu0  ;;  %2350 = vmatprep.mubr.bf16.mxu1 %v1222_v15 }
 0x461   :  { %v2152_v20 = vpop.f32.mrb[79].mxu0 }
 0x462   :  { %v2153_v21 = vadd.f32 %v2152_v20, %v2151_v18  ;;  %v1146_v22 = vadd.f32 %v2150_v17, %v3031_v19 }
 0x464   :  { %v1149_v23 = vadd.f32 %v2153_v21, %v3031_v19 }
 0x466   :  { %v1223_v25 = vpack.c.bf16 %v1149_v23, %v1146_v22  ;;  %v2154_v26 = vpop.f32.mrb[80].mxu0 }
 0x467   :  { %v2155_v27 = vpop.f32.mrb[81].mxu0 }
 0x468   :  { %2351 = vmatmul.mubr.bf16.gmra.mrb[92].mxu1 %v1223_v25  ;;  %v2156_v28 = vadd.f32 %v2155_v27, %v2154_v26  ;;  %v2157_v29 = vpop.f32.mrb[82].mxu0 }
 0x469   :  { %v2158_v30 = vpop.f32.mrb[83].mxu0 }
 0x46a   :  { %v2159_v31 = vadd.f32 %v2158_v30, %v2157_v29  ;;  %v1154_v32 = vadd.f32 %v2156_v28, %v3031_v19 }
 0x46c   :  { %v1157_v33 = vadd.f32 %v2159_v31, %v3031_v19 }
 0x46e   :  { %v2160_v34 = vpop.f32.mrb[84].mxu0  ;;  %v1224_v36 = vpack.c.bf16 %v1157_v33, %v1154_v32 }
 0x46f   :  { %v2161_v37 = vpop.f32.mrb[85].mxu0 }
 0x470   :  { %v2162_v40 = vadd.f32 %v2161_v37, %v2160_v34  ;;  %v2163_v41 = vpop.f32.mrb[86].mxu0  ;;  %2354 = vmatprep.mubr.bf16.mxu1 %v1224_v36  ;;  %v1464_v36 = vlaneseq }
 0x471   :  { %v2164_v44 = vpop.f32.mrb[87].mxu0 }
 0x472   :  { %v2165_v45 = vadd.f32 %v2164_v44, %v2163_v41  ;;  %v1162_v46 = vadd.f32 %v2162_v40, %v3031_v19  ;;  %v3065_v37 = vand.u32 127, %v1464_v36  ;;  %v3070_v40 = vld [vmem:[%s3528_s7] ss:$0 sm:$0xff] }
 0x474   :  { %v1165_v47 = vadd.f32 %v2165_v45, %v3031_v19  ;;  %vm1466_vm0 = vcmp.lt.s32.totalorder %v3065_v37, 8 }
 0x476   :  { %v1225_v48 = vpack.c.bf16 %v1165_v47, %v1162_v46  ;;  %v2166_v58 = vpop.f32.mrb[88].mxu0 }
 0x477   :  { %v2167_v59 = vpop.f32.mrb[89].mxu0 }
 0x478   :  { %2355 = vmatmul.mubr.bf16.gmra.mrb[96].mxu1 %v1225_v48  ;;  %v2168_v60 = vadd.f32 %v2167_v59, %v2166_v58  ;;  %v2169_v61 = vpop.f32.mrb[90].mxu0 }
 0x479   :  { %v2170_v62 = vpop.f32.mrb[91].mxu0 }
 0x47a   :  { %v2171_v63 = vadd.f32 %v2170_v62, %v2169_v61  ;;  %v1170_v0 = vadd.f32 %v2168_v60, %v3031_v19 }
 0x47c   :  { %v1173_v1 = vadd.f32 %v2171_v63, %v3031_v19 }
 0x47e   :  { %v2172_v2 = vpop.f32.mrb[92].mxu0  ;;  %v1226_v3 = vpack.c.bf16 %v1173_v1, %v1170_v0 }
 0x47f   :  { %v2173_v4 = vpop.f32.mrb[93].mxu0 }
 0x480   :  { %v2174_v5 = vadd.f32 %v2173_v4, %v2172_v2  ;;  %v2175_v6 = vpop.f32.mrb[94].mxu0  ;;  %2358 = vmatprep.mubr.bf16.mxu1 %v1226_v3 }
 0x481   :  { %v2176_v7 = vpop.f32.mrb[95].mxu0 }
 0x482   :  { %v2177_v8 = vadd.f32 %v2176_v7, %v2175_v6  ;;  %v1178_v9 = vadd.f32 %v2174_v5, %v3031_v19 }
 0x484   :  { %v1181_v13 = vadd.f32 %v2177_v8, %v3031_v19 }
 0x486   :  { %v1227_v38 = vpack.c.bf16 %v1181_v13, %v1178_v9  ;;  %v2178_v39 = vpop.f32.mrb[96].mxu0 }
 0x487   :  { %v2179_v42 = vpop.f32.mrb[97].mxu0 }
 0x488   :  { %2359 = vmatmul.mubr.bf16.gmra.mrb[100].mxu1 %v1227_v38  ;;  %v2180_v49 = vadd.f32 %v2179_v42, %v2178_v39  ;;  %v2181_v52 = vpop.f32.mrb[98].mxu0 }
 0x489   :  { %v2182_v11 = vpop.f32.mrb[99].mxu0 }
 0x48a   :  { %v2183_v35 = vadd.f32 %v2182_v11, %v2181_v52  ;;  %v1186_v50 = vadd.f32 %v2180_v49, %v3031_v19 }
 0x48c   :  { %v1189_v53 = vadd.f32 %v2183_v35, %v3031_v19 }
 0x48e   :  { %v2184_v55 = vpop.f32.mrb[100].mxu0  ;;  %v1228_v57 = vpack.c.bf16 %v1189_v53, %v1186_v50 }
 0x48f   :  { %v2185_v43 = vpop.f32.mrb[101].mxu0 }
 0x490   :  { %v2186_v51 = vadd.f32 %v2185_v43, %v2184_v55  ;;  %v2187_v54 = vpop.f32.mrb[102].mxu0  ;;  %2362 = vmatprep.mubr.bf16.mxu1 %v1228_v57 }
 0x491   :  { %v2188_v56 = vpop.f32.mrb[103].mxu0 }
 0x492   :  { %v2189_v24 = vadd.f32 %v2188_v56, %v2187_v54  ;;  %v1194_v10 = vadd.f32 %v2186_v51, %v3031_v19 }
 0x494   :  { %v1197_v12 = vadd.f32 %v2189_v24, %v3031_v19 }
 0x496   :  { %v1229_v14 = vpack.c.bf16 %v1197_v12, %v1194_v10  ;;  %v2190_v15 = vpop.f32.mrb[104].mxu0 }
 0x497   :  { %v2191_v16 = vpop.f32.mrb[105].mxu0 }
 0x498   :  { %2363 = vmatmul.mubr.bf16.gmra.mrb[104].mxu1 %v1229_v14  ;;  %v2192_v17 = vadd.f32 %v2191_v16, %v2190_v15  ;;  %v2193_v18 = vpop.f32.mrb[106].mxu0 }
 0x499   :  { %v2194_v20 = vpop.f32.mrb[107].mxu0 }
 0x49a   :  { %v2195_v21 = vadd.f32 %v2194_v20, %v2193_v18  ;;  %v1202_v22 = vadd.f32 %v2192_v17, %v3031_v19 }
 0x49c   :  { %v1205_v23 = vadd.f32 %v2195_v21, %v3031_v19 }
 0x49e   :  { %v2196_v25 = vpop.f32.mrb[108].mxu0  ;;  %v1230_v26 = vpack.c.bf16 %v1205_v23, %v1202_v22 }
 0x49f   :  { %v2197_v27 = vpop.f32.mrb[109].mxu0 }
 0x4a0   :  { %v2198_v28 = vadd.f32 %v2197_v27, %v2196_v25  ;;  %v2199_v29 = vpop.f32.mrb[110].mxu0  ;;  %2366 = vmatprep.mubr.bf16.mxu1 %v1230_v26 }
 0x4a1   :  { %v2200_v30 = vpop.f32.mrb[111].mxu0 }
 0x4a2   :  { %v2201_v31 = vadd.f32 %v2200_v30, %v2199_v29  ;;  %v1210_v32 = vadd.f32 %v2198_v28, %v3031_v19 }
 0x4a4   :  { %v1213_v33 = vadd.f32 %v2201_v31, %v3031_v19 }
 0x4a6   :  { %v1231_v34 = vpack.c.bf16 %v1213_v33, %v1210_v32 }
 0x4a8   :  { %2367 = vmatmul.mubr.bf16.gmra.mrb[108].mxu1 %v1231_v34 }
 0x50b   :  { %v2340_v41 = vpop.f32.mrb[80].mxu1 }
 0x50c   :  { %v1346_v44 = vadd.f32 %v2340_v41, %v3070_v40  ;;  %v1337_v45 = vpop.f32.mrb[81].mxu1 }
 0x50d   :  { %v1338_v46 = vadd.f32 %v3070_v40, %v1337_v45  ;;  %v2341_v47 = vpop.f32.mrb[82].mxu1 }
 0x50e   :  { %v3077_v19 = vsel %vm1466_vm0, %v1346_v44, -inf  ;;  %v1349_v48 = vadd.f32 %v2341_v47, %v3070_v40  ;;  %v1340_v58 = vpop.f32.mrb[83].mxu1 }
 0x50f   :  { %1503 = vmax.xlane.f32.xlu1 %v3077_v19  ;;  %v1341_v59 = vadd.f32 %v3070_v40, %v1340_v58  ;;  %v3084_v60 = vsel %vm1466_vm0, %v1338_v46, -inf }
 0x510   :  { %1499 = vmax.xlane.f32.xlu0 %v3084_v60  ;;  %v3089_v61 = vsel %vm1466_vm0, %v1349_v48, -inf }
 0x511   :  { %v3094_v62 = vsel %vm1466_vm0, %v1341_v59, -inf }
 0x513   :  { %1505 = vmax.xlane.f32.xlu1 %v3089_v61 }
 0x514   :  { %1501 = vmax.xlane.f32.xlu0 %v3094_v62 }
 0x51b   :  { %v2344_v63 = vpop.f32.mrb[84].mxu1 }
 0x51c   :  { %v1362_v0 = vadd.f32 %v2344_v63, %v3070_v40  ;;  %v1353_v1 = vpop.f32.mrb[85].mxu1 }
 0x51d   :  { %v2345_v2 = vpop.f32.mrb[86].mxu1  ;;  %v1354_v3 = vadd.f32 %v3070_v40, %v1353_v1 }
 0x51e   :  { %v1365_v4 = vadd.f32 %v2345_v2, %v3070_v40  ;;  %v3102_v5 = vsel %vm1466_vm0, %v1362_v0, -inf  ;;  %v1356_v6 = vpop.f32.mrb[87].mxu1 }
 0x51f   :  { %1511 = vmax.xlane.f32.xlu0 %v3102_v5  ;;  %v1357_v8 = vadd.f32 %v3070_v40, %v1356_v6  ;;  %v3113_v9 = vsel %vm1466_vm0, %v1354_v3, -inf }
 0x520   :  { %v3107_v7 = vsel %vm1466_vm0, %v1365_v4, -inf }
 0x521   :  { %1513 = vmax.xlane.f32.xlu1 %v3107_v7  ;;  %v3118_v13 = vsel %vm1466_vm0, %v1357_v8, -inf }
 0x523   :  { %1507 = vmax.xlane.f32.xlu0 %v3113_v9 }
 0x525   :  { %1509 = vmax.xlane.f32.xlu1 %v3118_v13 }
 0x52b   :  { %v2348_v38 = vpop.f32.mrb[88].mxu1 }
 0x52c   :  { %v1378_v39 = vadd.f32 %v2348_v38, %v3070_v40  ;;  %v1369_v42 = vpop.f32.mrb[89].mxu1 }
 0x52d   :  { %v2349_v49 = vpop.f32.mrb[90].mxu1  ;;  %v1370_v52 = vadd.f32 %v3070_v40, %v1369_v42 }
 0x52e   :  { %v1381_v11 = vadd.f32 %v2349_v49, %v3070_v40  ;;  %v3126_v35 = vsel %vm1466_vm0, %v1378_v39, -inf  ;;  %v1372_v50 = vpop.f32.mrb[91].mxu1 }
 0x52f   :  { %1519 = vmax.xlane.f32.xlu0 %v3126_v35  ;;  %v1373_v53 = vadd.f32 %v3070_v40, %v1372_v50  ;;  %v3137_v57 = vsel %vm1466_vm0, %v1370_v52, -inf }
 0x530   :  { %v3132_v55 = vsel %vm1466_vm0, %v1381_v11, -inf }
 0x531   :  { %1521 = vmax.xlane.f32.xlu1 %v3132_v55  ;;  %v3142_v43 = vsel %vm1466_vm0, %v1373_v53, -inf }
 0x533   :  { %1515 = vmax.xlane.f32.xlu0 %v3137_v57 }
 0x535   :  { %1517 = vmax.xlane.f32.xlu1 %v3142_v43 }
 0x53b   :  { %v2352_v51 = vpop.f32.mrb[92].mxu1 }
 0x53c   :  { %v1394_v54 = vadd.f32 %v2352_v51, %v3070_v40  ;;  %v1385_v56 = vpop.f32.mrb[93].mxu1 }
 0x53d   :  { %v2353_v24 = vpop.f32.mrb[94].mxu1  ;;  %v1386_v10 = vadd.f32 %v3070_v40, %v1385_v56 }
 0x53e   :  { %v1397_v12 = vadd.f32 %v2353_v24, %v3070_v40  ;;  %v3150_v14 = vsel %vm1466_vm0, %v1394_v54, -inf  ;;  %v1388_v15 = vpop.f32.mrb[95].mxu1 }
 0x53f   :  { %1527 = vmax.xlane.f32.xlu0 %v3150_v14  ;;  %v1389_v16 = vadd.f32 %v3070_v40, %v1388_v15  ;;  %v3161_v18 = vsel %vm1466_vm0, %v1386_v10, -inf }
 0x540   :  { %v3156_v17 = vsel %vm1466_vm0, %v1397_v12, -inf }
 0x541   :  { %1529 = vmax.xlane.f32.xlu1 %v3156_v17  ;;  %v3166_v20 = vsel %vm1466_vm0, %v1389_v16, -inf }
 0x543   :  { %1523 = vmax.xlane.f32.xlu0 %v3161_v18 }
 0x545   :  { %1525 = vmax.xlane.f32.xlu1 %v3166_v20 }
 0x54b   :  { %v2356_v21 = vpop.f32.mrb[96].mxu1 }
 0x54c   :  { %v1410_v22 = vadd.f32 %v2356_v21, %v3070_v40  ;;  %v1401_v23 = vpop.f32.mrb[97].mxu1 }
 0x54d   :  { %v2357_v25 = vpop.f32.mrb[98].mxu1  ;;  %v1402_v26 = vadd.f32 %v3070_v40, %v1401_v23 }
 0x54e   :  { %v1413_v27 = vadd.f32 %v2357_v25, %v3070_v40  ;;  %v3174_v28 = vsel %vm1466_vm0, %v1410_v22, -inf  ;;  %v1404_v29 = vpop.f32.mrb[99].mxu1 }
 0x54f   :  { %1535 = vmax.xlane.f32.xlu0 %v3174_v28  ;;  %v1405_v30 = vadd.f32 %v3070_v40, %v1404_v29  ;;  %v3185_v32 = vsel %vm1466_vm0, %v1402_v26, -inf }
 0x550   :  { %v3180_v31 = vsel %vm1466_vm0, %v1413_v27, -inf }
 0x551   :  { %1537 = vmax.xlane.f32.xlu1 %v3180_v31  ;;  %v3190_v33 = vsel %vm1466_vm0, %v1405_v30, -inf }
 0x553   :  { %1531 = vmax.xlane.f32.xlu0 %v3185_v32 }
 0x555   :  { %1533 = vmax.xlane.f32.xlu1 %v3190_v33 }
 0x55b   :  { %v2360_v34 = vpop.f32.mrb[100].mxu1 }
 0x55c   :  { %v1426_v36 = vadd.f32 %v2360_v34, %v3070_v40  ;;  %v1417_v41 = vpop.f32.mrb[101].mxu1 }
 0x55d   :  { %v2361_v44 = vpop.f32.mrb[102].mxu1  ;;  %v1418_v45 = vadd.f32 %v3070_v40, %v1417_v41 }
 0x55e   :  { %v1429_v46 = vadd.f32 %v2361_v44, %v3070_v40  ;;  %v3198_v47 = vsel %vm1466_vm0, %v1426_v36, -inf  ;;  %v1420_v48 = vpop.f32.mrb[103].mxu1 }
 0x55f   :  { %1543 = vmax.xlane.f32.xlu0 %v3198_v47  ;;  %v1421_v58 = vadd.f32 %v3070_v40, %v1420_v48  ;;  %v3209_v63 = vsel %vm1466_vm0, %v1418_v45, -inf }
 0x560   :  { %v3204_v59 = vsel %vm1466_vm0, %v1429_v46, -inf }
 0x561   :  { %1545 = vmax.xlane.f32.xlu1 %v3204_v59  ;;  %v3214_v0 = vsel %vm1466_vm0, %v1421_v58, -inf }
 0x563   :  { %1539 = vmax.xlane.f32.xlu0 %v3209_v63 }
 0x565   :  { %1541 = vmax.xlane.f32.xlu1 %v3214_v0 }
 0x56b   :  { %v2364_v1 = vpop.f32.mrb[104].mxu1 }
 0x56c   :  { %v1442_v2 = vadd.f32 %v2364_v1, %v3070_v40  ;;  %v1433_v3 = vpop.f32.mrb[105].mxu1 }
 0x56d   :  { %v2365_v4 = vpop.f32.mrb[106].mxu1  ;;  %v1434_v6 = vadd.f32 %v3070_v40, %v1433_v3 }
 0x56e   :  { %v1445_v8 = vadd.f32 %v2365_v4, %v3070_v40  ;;  %v3222_v38 = vsel %vm1466_vm0, %v1442_v2, -inf  ;;  %v1436_v39 = vpop.f32.mrb[107].mxu1 }
 0x56f   :  { %1551 = vmax.xlane.f32.xlu0 %v3222_v38  ;;  %v1437_v42 = vadd.f32 %v3070_v40, %v1436_v39  ;;  %v3233_v52 = vsel %vm1466_vm0, %v1434_v6, -inf }
 0x570   :  { %v3228_v49 = vsel %vm1466_vm0, %v1445_v8, -inf }
 0x571   :  { %1553 = vmax.xlane.f32.xlu1 %v3228_v49  ;;  %v3238_v11 = vsel %vm1466_vm0, %v1437_v42, -inf }
 0x573   :  { %1547 = vmax.xlane.f32.xlu0 %v3233_v52 }
 0x575   :  { %1549 = vmax.xlane.f32.xlu1 %v3238_v11 }
 0x57b   :  { %v2368_v50 = vpop.f32.mrb[108].mxu1 }
 0x57c   :  { %v1449_v53 = vpop.f32.mrb[109].mxu1  ;;  %v1458_v24 = vadd.f32 %v2368_v50, %v3070_v40 }
 0x57d   :  { %v1450_v51 = vadd.f32 %v3070_v40, %v1449_v53  ;;  %v2369_v54 = vpop.f32.mrb[110].mxu1 }
 0x57e   :  { %v1452_v56 = vpop.f32.mrb[111].mxu1  ;;  %v1461_v15 = vadd.f32 %v2369_v54, %v3070_v40  ;;  %v3257_v21 = vsel %vm1466_vm0, %v1458_v24, -inf }
 0x57f   :  { %v1453_v10 = vadd.f32 %v3070_v40, %v1452_v56  ;;  %v3246_v12 = vsel %vm1466_vm0, %v1450_v51, -inf }
 0x580   :  { %1555 = vmax.xlane.f32.xlu0 %v3246_v12  ;;  %v3262_v22 = vsel %vm1466_vm0, %v1461_v15, -inf }
 0x581   :  { %v3252_v16 = vsel %vm1466_vm0, %v1453_v10, -inf }
 0x582   :  { %1557 = vmax.xlane.f32.xlu1 %v3252_v16 }
 0x584   :  { %1559 = vmax.xlane.f32.xlu0 %v3257_v21 }
 0x586   :  { %1561 = vmax.xlane.f32.xlu1 %v3262_v22 }
 0x59c   :  { %v1504_v23 = vpop.xlane.xlu1 %1503 }
 0x59d   :  { %v3266_v40 = vsub.f32 %v3077_v19, %v1504_v23  ;;  %v1500_v25 = vpop.xlane.xlu0 %1499 }
 0x59e   :  { %v3269_v26 = vsub.f32 %v3084_v60, %v1500_v25 }
 0x59f   :  { %v1599_v27 = vmul.f32 1.442695, %v3266_v40 }
 0x5a0   :  { %v1595_v29 = vmul.f32 1.442695, %v3269_v26  ;;  %v1506_v30 = vpop.xlane.xlu1 %1505 }
 0x5a1   :  { %2474 = vpow2.f32 %v1599_v27  ;;  %v3274_v37 = vsub.f32 %v3089_v61, %v1506_v30  ;;  %v1502_v34 = vpop.xlane.xlu0 %1501 }
 0x5a2   :  { %v3277_v36 = vsub.f32 %v3094_v62, %v1502_v34  ;;  %2476 = vpow2.f32 %v1595_v29 }
 0x5a3   :  { %v1601_v19 = vmul.f32 1.442695, %v3274_v37 }
 0x5a4   :  { %v1597_v60 = vmul.f32 1.442695, %v3277_v36 }
 0x5a5   :  { %2478 = vpow2.f32 %v1601_v19 }
 0x5a6   :  { %2480 = vpow2.f32 %v1597_v60 }
 0x5ab   :  { %v2475_v41 = vpop.eup %2474 }
 0x5ac   :  { %1663 = vadd.xlane.f32.xlu0 %v2475_v41  ;;  %v1512_v44 = vpop.xlane.xlu0 %1511  ;;  %v2477_v46 = vpop.eup %2476 }
 0x5ad   :  { %v3282_v45 = vsub.f32 %v3102_v5, %v1512_v44 }
 0x5ae   :  { %v1514_v61 = vpop.xlane.xlu1 %1513 }
 0x5af   :  { %v2479_v48 = vpop.eup %2478  ;;  %v1607_v58 = vmul.f32 1.442695, %v3282_v45  ;;  %v3286_v62 = vsub.f32 %v3107_v7, %v1514_v61 }
 0x5b0   :  { %1665 = vadd.xlane.f32.xlu1 %v2479_v48  ;;  %1659 = vadd.xlane.f32.xlu0 %v2477_v46  ;;  %v1508_v1 = vpop.xlane.xlu0 %1507  ;;  %v2481_v5 = vpop.eup %2480 }
 0x5b1   :  { %2482 = vpow2.f32 %v1607_v58  ;;  %v1609_v2 = vmul.f32 1.442695, %v3286_v62  ;;  %v3290_v3 = vsub.f32 %v3113_v9, %v1508_v1 }
 0x5b2   :  { %v1510_v4 = vpop.xlane.xlu1 %1509 }
 0x5b3   :  { %2484 = vpow2.f32 %v1609_v2  ;;  %v1603_v6 = vmul.f32 1.442695, %v3290_v3  ;;  %v3294_v8 = vsub.f32 %v3118_v13, %v1510_v4 }
 0x5b4   :  { %1661 = vadd.xlane.f32.xlu1 %v2481_v5 }
 0x5b5   :  { %2486 = vpow2.f32 %v1603_v6  ;;  %v1605_v7 = vmul.f32 1.442695, %v3294_v8 }
 0x5b7   :  { %2488 = vpow2.f32 %v1605_v7 }
 0x5bb   :  { %v2483_v39 = vpop.eup %2482 }
 0x5bc   :  { %1671 = vadd.xlane.f32.xlu0 %v2483_v39  ;;  %v1520_v42 = vpop.xlane.xlu0 %1519 }
 0x5bd   :  { %v2485_v50 = vpop.eup %2484  ;;  %v3298_v9 = vsub.f32 %v3126_v35, %v1520_v42 }
 0x5be   :  { %v1522_v53 = vpop.xlane.xlu1 %1521  ;;  %1673 = vadd.xlane.f32.xlu1 %v2485_v50 }
 0x5bf   :  { %v2487_v51 = vpop.eup %2486  ;;  %v1615_v54 = vmul.f32 1.442695, %v3298_v9  ;;  %v3302_v13 = vsub.f32 %v3132_v55, %v1522_v53 }
 0x5c0   :  { %1667 = vadd.xlane.f32.xlu0 %v2487_v51  ;;  %v1516_v56 = vpop.xlane.xlu0 %1515 }
 0x5c1   :  { %v2489_v24 = vpop.eup %2488  ;;  %2490 = vpow2.f32 %v1615_v54  ;;  %v1617_v10 = vmul.f32 1.442695, %v3302_v13  ;;  %v3306_v15 = vsub.f32 %v3137_v57, %v1516_v56 }
 0x5c2   :  { %v1518_v23 = vpop.xlane.xlu1 %1517  ;;  %1669 = vadd.xlane.f32.xlu1 %v2489_v24 }
 0x5c3   :  { %2492 = vpow2.f32 %v1617_v10  ;;  %v1611_v35 = vmul.f32 1.442695, %v3306_v15  ;;  %v3310_v25 = vsub.f32 %v3142_v43, %v1518_v23 }
 0x5c5   :  { %2494 = vpow2.f32 %v1611_v35  ;;  %v1613_v55 = vmul.f32 1.442695, %v3310_v25 }
 0x5c7   :  { %2496 = vpow2.f32 %v1613_v55 }
 0x5cb   :  { %v2491_v27 = vpop.eup %2490 }
 0x5cc   :  { %1679 = vadd.xlane.f32.xlu0 %v2491_v27  ;;  %v1528_v29 = vpop.xlane.xlu0 %1527 }
 0x5cd   :  { %v2493_v30 = vpop.eup %2492  ;;  %v3314_v34 = vsub.f32 %v3150_v14, %v1528_v29 }
 0x5ce   :  { %v1530_v57 = vpop.xlane.xlu1 %1529  ;;  %1681 = vadd.xlane.f32.xlu1 %v2493_v30 }
 0x5cf   :  { %v2495_v19 = vpop.eup %2494  ;;  %v1623_v60 = vmul.f32 1.442695, %v3314_v34  ;;  %v3318_v41 = vsub.f32 %v3156_v17, %v1530_v57 }
 0x5d0   :  { %1675 = vadd.xlane.f32.xlu0 %v2495_v19  ;;  %v1524_v43 = vpop.xlane.xlu0 %1523 }
 0x5d1   :  { %v2497_v44 = vpop.eup %2496  ;;  %2498 = vpow2.f32 %v1623_v60  ;;  %v1625_v46 = vmul.f32 1.442695, %v3318_v41  ;;  %v3322_v61 = vsub.f32 %v3161_v18, %v1524_v43 }
 0x5d2   :  { %v1526_v48 = vpop.xlane.xlu1 %1525  ;;  %1677 = vadd.xlane.f32.xlu1 %v2497_v44 }
 0x5d3   :  { %2500 = vpow2.f32 %v1625_v46  ;;  %v1619_v14 = vmul.f32 1.442695, %v3322_v61  ;;  %v3326_v58 = vsub.f32 %v3166_v20, %v1526_v48 }
 0x5d5   :  { %2502 = vpow2.f32 %v1619_v14  ;;  %v1621_v17 = vmul.f32 1.442695, %v3326_v58 }
 0x5d7   :  { %2504 = vpow2.f32 %v1621_v17 }
 0x5db   :  { %v2499_v1 = vpop.eup %2498 }
 0x5dc   :  { %1687 = vadd.xlane.f32.xlu0 %v2499_v1  ;;  %v1536_v2 = vpop.xlane.xlu0 %1535 }
 0x5dd   :  { %v2501_v4 = vpop.eup %2500  ;;  %v3330_v5 = vsub.f32 %v3174_v28, %v1536_v2 }
 0x5de   :  { %v1538_v18 = vpop.xlane.xlu1 %1537  ;;  %1689 = vadd.xlane.f32.xlu1 %v2501_v4 }
 0x5df   :  { %v2503_v6 = vpop.eup %2502  ;;  %v1631_v7 = vmul.f32 1.442695, %v3330_v5  ;;  %v3334_v39 = vsub.f32 %v3180_v31, %v1538_v18 }
 0x5e0   :  { %1683 = vadd.xlane.f32.xlu0 %v2503_v6  ;;  %v1532_v20 = vpop.xlane.xlu0 %1531 }
 0x5e1   :  { %v2505_v42 = vpop.eup %2504  ;;  %2506 = vpow2.f32 %v1631_v7  ;;  %v1633_v50 = vmul.f32 1.442695, %v3334_v39  ;;  %v3338_v53 = vsub.f32 %v3185_v32, %v1532_v20 }
 0x5e2   :  { %v1534_v51 = vpop.xlane.xlu1 %1533  ;;  %1685 = vadd.xlane.f32.xlu1 %v2505_v42 }
 0x5e3   :  { %2508 = vpow2.f32 %v1633_v50  ;;  %v1627_v28 = vmul.f32 1.442695, %v3338_v53  ;;  %v3342_v54 = vsub.f32 %v3190_v33, %v1534_v51 }
 0x5e5   :  { %2510 = vpow2.f32 %v1627_v28  ;;  %v1629_v31 = vmul.f32 1.442695, %v3342_v54 }
 0x5e7   :  { %2512 = vpow2.f32 %v1629_v31 }
 0x5eb   :  { %v2507_v56 = vpop.eup %2506 }
 0x5ec   :  { %1695 = vadd.xlane.f32.xlu0 %v2507_v56  ;;  %v1544_v24 = vpop.xlane.xlu0 %1543 }
 0x5ed   :  { %v2509_v10 = vpop.eup %2508  ;;  %v3346_v23 = vsub.f32 %v3198_v47, %v1544_v24 }
 0x5ee   :  { %v1546_v32 = vpop.xlane.xlu1 %1545  ;;  %1697 = vadd.xlane.f32.xlu1 %v2509_v10 }
 0x5ef   :  { %v2511_v35 = vpop.eup %2510  ;;  %v1639_v55 = vmul.f32 1.442695, %v3346_v23  ;;  %v3350_v27 = vsub.f32 %v3204_v59, %v1546_v32 }
 0x5f0   :  { %1691 = vadd.xlane.f32.xlu0 %v2511_v35  ;;  %v1540_v33 = vpop.xlane.xlu0 %1539 }
 0x5f1   :  { %v2513_v29 = vpop.eup %2512  ;;  %2514 = vpow2.f32 %v1639_v55  ;;  %v1641_v30 = vmul.f32 1.442695, %v3350_v27  ;;  %v3354_v57 = vsub.f32 %v3209_v63, %v1540_v33 }
 0x5f2   :  { %v1542_v19 = vpop.xlane.xlu1 %1541  ;;  %1693 = vadd.xlane.f32.xlu1 %v2513_v29 }
 0x5f3   :  { %2516 = vpow2.f32 %v1641_v30  ;;  %v1635_v47 = vmul.f32 1.442695, %v3354_v57  ;;  %v3358_v60 = vsub.f32 %v3214_v0, %v1542_v19 }
 0x5f5   :  { %2518 = vpow2.f32 %v1635_v47  ;;  %v1637_v59 = vmul.f32 1.442695, %v3358_v60 }
 0x5f7   :  { %2520 = vpow2.f32 %v1637_v59 }
 0x5fb   :  { %v2515_v43 = vpop.eup %2514 }
 0x5fc   :  { %1703 = vadd.xlane.f32.xlu0 %v2515_v43  ;;  %v1552_v44 = vpop.xlane.xlu0 %1551 }
 0x5fd   :  { %v2517_v46 = vpop.eup %2516  ;;  %v3362_v48 = vsub.f32 %v3222_v38, %v1552_v44 }
 0x5fe   :  { %v1554_v63 = vpop.xlane.xlu1 %1553  ;;  %1705 = vadd.xlane.f32.xlu1 %v2517_v46 }
 0x5ff   :  { %v2519_v14 = vpop.eup %2518  ;;  %v1647_v17 = vmul.f32 1.442695, %v3362_v48  ;;  %v3366_v1 = vsub.f32 %v3228_v49, %v1554_v63 }
 0x600   :  { %1699 = vadd.xlane.f32.xlu0 %v2519_v14  ;;  %v1548_v0 = vpop.xlane.xlu0 %1547 }
 0x601   :  { %v2521_v2 = vpop.eup %2520  ;;  %2522 = vpow2.f32 %v1647_v17  ;;  %v1649_v4 = vmul.f32 1.442695, %v3366_v1  ;;  %v3370_v18 = vsub.f32 %v3233_v52, %v1548_v0 }
 0x602   :  { %v1550_v6 = vpop.xlane.xlu1 %1549  ;;  %1701 = vadd.xlane.f32.xlu1 %v2521_v2 }
 0x603   :  { %2524 = vpow2.f32 %v1649_v4  ;;  %v1643_v38 = vmul.f32 1.442695, %v3370_v18  ;;  %v3374_v7 = vsub.f32 %v3238_v11, %v1550_v6 }
 0x605   :  { %2526 = vpow2.f32 %v1643_v38  ;;  %v1645_v49 = vmul.f32 1.442695, %v3374_v7 }
 0x607   :  { %2528 = vpow2.f32 %v1645_v49 }
 0x60b   :  { %v2523_v20 = vpop.eup %2522 }
 0x60c   :  { %1711 = vadd.xlane.f32.xlu0 %v2523_v20 }
 0x60d   :  { %v2525_v42 = vpop.eup %2524  ;;  %v1556_v50 = vpop.xlane.xlu0 %1555 }
 0x60e   :  { %v3378_v51 = vsub.f32 %v3246_v12, %v1556_v50  ;;  %1713 = vadd.xlane.f32.xlu1 %v2525_v42 }
 0x60f   :  { %v2527_v52 = vpop.eup %2526  ;;  %v1558_v28 = vpop.xlane.xlu1 %1557 }
 0x610   :  { %v1651_v31 = vmul.f32 1.442695, %v3378_v51  ;;  %v3382_v56 = vsub.f32 %v3252_v16, %v1558_v28  ;;  %1707 = vadd.xlane.f32.xlu0 %v2527_v52 }
 0x611   :  { %v2529_v11 = vpop.eup %2528  ;;  %v1560_v24 = vpop.xlane.xlu0 %1559 }
 0x612   :  { %2530 = vpow2.f32 %v1651_v31  ;;  %v1653_v10 = vmul.f32 1.442695, %v3382_v56  ;;  %v3386_v32 = vsub.f32 %v3257_v21, %v1560_v24  ;;  %1709 = vadd.xlane.f32.xlu1 %v2529_v11 }
 0x613   :  { %v1562_v12 = vpop.xlane.xlu1 %1561 }
 0x614   :  { %2532 = vpow2.f32 %v1653_v10  ;;  %v1655_v35 = vmul.f32 1.442695, %v3386_v32  ;;  %v3390_v55 = vsub.f32 %v3262_v22, %v1562_v12 }
 0x616   :  { %2534 = vpow2.f32 %v1655_v35  ;;  %v1657_v16 = vmul.f32 1.442695, %v3390_v55 }
 0x618   :  { %2536 = vpow2.f32 %v1657_v16 }
 0x61c   :  { %v2531_v33 = vpop.eup %2530 }
 0x61d   :  { %1715 = vadd.xlane.f32.xlu0 %v2531_v33 }
 0x61e   :  { %v2533_v29 = vpop.eup %2532 }
 0x61f   :  { %1717 = vadd.xlane.f32.xlu1 %v2533_v29 }
 0x620   :  { %v2535_v30 = vpop.eup %2534 }
 0x621   :  { %1719 = vadd.xlane.f32.xlu0 %v2535_v30 }
 0x622   :  { %v2537_v21 = vpop.eup %2536 }
 0x623   :  { %1721 = vadd.xlane.f32.xlu1 %v2537_v21 }
 0x639   :  { %v1664_v19 = vpop.xlane.xlu0 %1663 }
 0x63a   :  { %2538 = vlog2.f32 %v1664_v19 }
 0x63d   :  { %v1666_v47 = vpop.xlane.xlu1 %1665  ;;  %v1660_v59 = vpop.xlane.xlu0 %1659 }
 0x63e   :  { %2540 = vlog2.f32 %v1666_v47 }
 0x63f   :  { %2542 = vlog2.f32 %v1660_v59 }
 0x641   :  { %v1662_v22 = vpop.xlane.xlu1 %1661 }
 0x642   :  { %2544 = vlog2.f32 %v1662_v22 }
 0x644   :  { %v2539_v43 = vpop.eup %2538 }
 0x645   :  { %v1728_v44 = vmul.f32 0.6931472, %v2539_v43 }
 0x647   :  { %v1789_v46 = vsub.f32 %v3266_v40, %v1728_v44 }
 0x648   :  { %v2541_v63 = vpop.eup %2540 }
 0x649   :  { %v2543_v14 = vpop.eup %2542  ;;  %1821 = vst [vmem:[%s3529_s8 + $0x10] sm:$0xff] %v1789_v46  ;;  %v1730_v17 = vmul.f32 0.6931472, %v2541_v63  ;;  %v1672_v0 = vpop.xlane.xlu0 %1671 }
 0x64a   :  { %v1724_v2 = vmul.f32 0.6931472, %v2543_v14  ;;  %2546 = vlog2.f32 %v1672_v0 }
 0x64b   :  { %v1790_v4 = vsub.f32 %v3274_v37, %v1730_v17  ;;  %v1674_v6 = vpop.xlane.xlu1 %1673 }
 0x64c   :  { %v2545_v38 = vpop.eup %2544  ;;  %v1787_v49 = vsub.f32 %v3269_v26, %v1724_v2  ;;  %2548 = vlog2.f32 %v1674_v6 }
 0x64d   :  { %1822 = vst [vmem:[%s3529_s8 + $0x18] sm:$0xff] %v1790_v4  ;;  %v1726_v40 = vmul.f32 0.6931472, %v2545_v38  ;;  %v1668_v20 = vpop.xlane.xlu0 %1667 }
 0x64e   :  { %1819 = vst [vmem:[%s3529_s8] sm:$0xff] %v1787_v49  ;;  %2550 = vlog2.f32 %v1668_v20 }
 0x64f   :  { %v1788_v42 = vsub.f32 %v3277_v36, %v1726_v40  ;;  %v1670_v50 = vpop.xlane.xlu1 %1669 }
 0x650   :  { %2552 = vlog2.f32 %v1670_v50 }
 0x651   :  { %1820 = vst [vmem:[%s3529_s8 + $0x8] sm:$0xff] %v1788_v42 }
 0x654   :  { %v2547_v26 = vpop.eup %2546 }
 0x655   :  { %v1736_v37 = vmul.f32 0.6931472, %v2547_v26 }
 0x656   :  { %v2549_v52 = vpop.eup %2548 }
 0x657   :  { %v1793_v28 = vsub.f32 %v3282_v45, %v1736_v37  ;;  %v1738_v31 = vmul.f32 0.6931472, %v2549_v52 }
 0x658   :  { %v2551_v11 = vpop.eup %2550 }
 0x659   :  { %1825 = vst [vmem:[%s3529_s8 + $0x30] sm:$0xff] %v1793_v28  ;;  %v1794_v24 = vsub.f32 %v3286_v62, %v1738_v31  ;;  %v1732_v36 = vmul.f32 0.6931472, %v2551_v11  ;;  %v1680_v10 = vpop.xlane.xlu0 %1679 }
 0x65a   :  { %v2553_v12 = vpop.eup %2552  ;;  %2554 = vlog2.f32 %v1680_v10 }
 0x65b   :  { %1826 = vst [vmem:[%s3529_s8 + $0x38] sm:$0xff] %v1794_v24  ;;  %v1791_v35 = vsub.f32 %v3290_v3, %v1732_v36  ;;  %v1734_v16 = vmul.f32 0.6931472, %v2553_v12  ;;  %v1682_v45 = vpop.xlane.xlu1 %1681 }
 0x65c   :  { %2556 = vlog2.f32 %v1682_v45 }
 0x65d   :  { %1823 = vst [vmem:[%s3529_s8 + $0x20] sm:$0xff] %v1791_v35  ;;  %v1792_v33 = vsub.f32 %v3294_v8, %v1734_v16  ;;  %v1676_v62 = vpop.xlane.xlu0 %1675 }
 0x65e   :  { %2558 = vlog2.f32 %v1676_v62 }
 0x65f   :  { %1824 = vst [vmem:[%s3529_s8 + $0x28] sm:$0xff] %v1792_v33  ;;  %v1678_v29 = vpop.xlane.xlu1 %1677 }
 0x660   :  { %2560 = vlog2.f32 %v1678_v29 }
 0x664   :  { %v2555_v30 = vpop.eup %2554 }
 0x665   :  { %v1744_v21 = vmul.f32 0.6931472, %v2555_v30 }
 0x666   :  { %v2557_v3 = vpop.eup %2556 }
 0x667   :  { %v1797_v19 = vsub.f32 %v3298_v9, %v1744_v21  ;;  %v1746_v47 = vmul.f32 0.6931472, %v2557_v3 }
 0x668   :  { %v2559_v59 = vpop.eup %2558 }
 0x669   :  { %1829 = vst [vmem:[%s3529_s8 + $0x50] sm:$0xff] %v1797_v19  ;;  %v1798_v8 = vsub.f32 %v3302_v13, %v1746_v47  ;;  %v1740_v22 = vmul.f32 0.6931472, %v2559_v59  ;;  %v1688_v43 = vpop.xlane.xlu0 %1687 }
 0x66a   :  { %v2561_v44 = vpop.eup %2560  ;;  %2562 = vlog2.f32 %v1688_v43 }
 0x66b   :  { %1830 = vst [vmem:[%s3529_s8 + $0x58] sm:$0xff] %v1798_v8  ;;  %v1795_v46 = vsub.f32 %v3306_v15, %v1740_v22  ;;  %v1742_v63 = vmul.f32 0.6931472, %v2561_v44  ;;  %v1690_v9 = vpop.xlane.xlu1 %1689 }
 0x66c   :  { %2564 = vlog2.f32 %v1690_v9 }
 0x66d   :  { %1827 = vst [vmem:[%s3529_s8 + $0x40] sm:$0xff] %v1795_v46  ;;  %v1796_v14 = vsub.f32 %v3310_v25, %v1742_v63  ;;  %v1684_v13 = vpop.xlane.xlu0 %1683 }
 0x66e   :  { %2566 = vlog2.f32 %v1684_v13 }
 0x66f   :  { %1828 = vst [vmem:[%s3529_s8 + $0x48] sm:$0xff] %v1796_v14  ;;  %v1686_v17 = vpop.xlane.xlu1 %1685 }
 0x670   :  { %2568 = vlog2.f32 %v1686_v17 }
 0x674   :  { %v2563_v0 = vpop.eup %2562 }
 0x675   :  { %v1752_v2 = vmul.f32 0.6931472, %v2563_v0 }
 0x676   :  { %v2565_v15 = vpop.eup %2564 }
 0x677   :  { %v1801_v4 = vsub.f32 %v3314_v34, %v1752_v2  ;;  %v1754_v6 = vmul.f32 0.6931472, %v2565_v15 }
 0x678   :  { %v2567_v38 = vpop.eup %2566 }
 0x679   :  { %1833 = vst [vmem:[%s3529_s8 + $0x70] sm:$0xff] %v1801_v4  ;;  %v1802_v25 = vsub.f32 %v3318_v41, %v1754_v6  ;;  %v1748_v49 = vmul.f32 0.6931472, %v2567_v38  ;;  %v1696_v40 = vpop.xlane.xlu0 %1695 }
 0x67a   :  { %v2569_v20 = vpop.eup %2568  ;;  %2570 = vlog2.f32 %v1696_v40 }
 0x67b   :  { %1834 = vst [vmem:[%s3529_s8 + $0x78] sm:$0xff] %v1802_v25  ;;  %v1799_v42 = vsub.f32 %v3322_v61, %v1748_v49  ;;  %v1750_v50 = vmul.f32 0.6931472, %v2569_v20  ;;  %v1698_v34 = vpop.xlane.xlu1 %1697 }
 0x67c   :  { %2572 = vlog2.f32 %v1698_v34 }
 0x67d   :  { %1831 = vst [vmem:[%s3529_s8 + $0x60] sm:$0xff] %v1799_v42  ;;  %v1800_v26 = vsub.f32 %v3326_v58, %v1750_v50  ;;  %v1692_v41 = vpop.xlane.xlu0 %1691 }
 0x67e   :  { %2574 = vlog2.f32 %v1692_v41 }
 0x67f   :  { %1832 = vst [vmem:[%s3529_s8 + $0x68] sm:$0xff] %v1800_v26  ;;  %v1694_v37 = vpop.xlane.xlu1 %1693 }
 0x680   :  { %2576 = vlog2.f32 %v1694_v37 }
 0x684   :  { %v2571_v52 = vpop.eup %2570 }
 0x685   :  { %v1760_v28 = vmul.f32 0.6931472, %v2571_v52 }
 0x686   :  { %v2573_v61 = vpop.eup %2572 }
 0x687   :  { %v1805_v31 = vsub.f32 %v3330_v5, %v1760_v28  ;;  %v1762_v11 = vmul.f32 0.6931472, %v2573_v61 }
 0x688   :  { %v2575_v24 = vpop.eup %2574 }
 0x689   :  { %1837 = vst [vmem:[%s3529_s8 + $0x90] sm:$0xff] %v1805_v31  ;;  %v1806_v58 = vsub.f32 %v3334_v39, %v1762_v11  ;;  %v1756_v36 = vmul.f32 0.6931472, %v2575_v24  ;;  %v1704_v10 = vpop.xlane.xlu0 %1703 }
 0x68a   :  { %v2577_v12 = vpop.eup %2576  ;;  %2578 = vlog2.f32 %v1704_v10 }
 0x68b   :  { %1838 = vst [vmem:[%s3529_s8 + $0x98] sm:$0xff] %v1806_v58  ;;  %v1803_v35 = vsub.f32 %v3338_v53, %v1756_v36  ;;  %v1758_v16 = vmul.f32 0.6931472, %v2577_v12  ;;  %v1706_v5 = vpop.xlane.xlu1 %1705 }
 0x68c   :  { %2580 = vlog2.f32 %v1706_v5 }
 0x68d   :  { %1835 = vst [vmem:[%s3529_s8 + $0x80] sm:$0xff] %v1803_v35  ;;  %v1804_v45 = vsub.f32 %v3342_v54, %v1758_v16  ;;  %v1700_v39 = vpop.xlane.xlu0 %1699 }
 0x68e   :  { %2582 = vlog2.f32 %v1700_v39 }
 0x68f   :  { %1836 = vst [vmem:[%s3529_s8 + $0x88] sm:$0xff] %v1804_v45  ;;  %v1702_v33 = vpop.xlane.xlu1 %1701 }
 0x690   :  { %2584 = vlog2.f32 %v1702_v33 }
 0x694   :  { %v2579_v62 = vpop.eup %2578 }
 0x695   :  { %v1768_v29 = vmul.f32 0.6931472, %v2579_v62 }
 0x696   :  { %v2581_v53 = vpop.eup %2580 }
 0x697   :  { %v1809_v30 = vsub.f32 %v3346_v23, %v1768_v29  ;;  %v1770_v21 = vmul.f32 0.6931472, %v2581_v53 }
 0x698   :  { %v2583_v3 = vpop.eup %2582 }
 0x699   :  { %1841 = vst [vmem:[%s3529_s8 + $0xb0] sm:$0xff] %v1809_v30  ;;  %v1810_v54 = vsub.f32 %v3350_v27, %v1770_v21  ;;  %v1764_v19 = vmul.f32 0.6931472, %v2583_v3  ;;  %v1712_v47 = vpop.xlane.xlu0 %1711 }
 0x69a   :  { %v2585_v59 = vpop.eup %2584  ;;  %2586 = vlog2.f32 %v1712_v47 }
 0x69b   :  { %1842 = vst [vmem:[%s3529_s8 + $0xb8] sm:$0xff] %v1810_v54  ;;  %v1807_v8 = vsub.f32 %v3354_v57, %v1764_v19  ;;  %v1766_v22 = vmul.f32 0.6931472, %v2585_v59  ;;  %v1714_v23 = vpop.xlane.xlu1 %1713 }
 0x69c   :  { %2588 = vlog2.f32 %v1714_v23 }
 0x69d   :  { %1839 = vst [vmem:[%s3529_s8 + $0xa0] sm:$0xff] %v1807_v8  ;;  %v1808_v43 = vsub.f32 %v3358_v60, %v1766_v22  ;;  %v1708_v27 = vpop.xlane.xlu0 %1707 }
 0x69e   :  { %2590 = vlog2.f32 %v1708_v27 }
 0x69f   :  { %1840 = vst [vmem:[%s3529_s8 + $0xa8] sm:$0xff] %v1808_v43  ;;  %v1710_v44 = vpop.xlane.xlu1 %1709 }
 0x6a0   :  { %2592 = vlog2.f32 %v1710_v44 }
 0x6a4   :  { %v2587_v46 = vpop.eup %2586 }
 0x6a5   :  { %v1776_v63 = vmul.f32 0.6931472, %v2587_v46 }
 0x6a6   :  { %v2589_v57 = vpop.eup %2588 }
 0x6a7   :  { %v1813_v9 = vsub.f32 %v3362_v48, %v1776_v63  ;;  %v1778_v14 = vmul.f32 0.6931472, %v2589_v57 }
 0x6a8   :  { %v2591_v13 = vpop.eup %2590 }
 0x6a9   :  { %1845 = vst [vmem:[%s3529_s8 + $0xd0] sm:$0xff] %v1813_v9  ;;  %v1814_v60 = vsub.f32 %v3366_v1, %v1778_v14  ;;  %v1772_v17 = vmul.f32 0.6931472, %v2591_v13 }
 0x6aa   :  { %v2593_v0 = vpop.eup %2592  ;;  %v1716_v2 = vpop.xlane.xlu0 %1715 }
 0x6ab   :  { %1846 = vst [vmem:[%s3529_s8 + $0xd8] sm:$0xff] %v1814_v60  ;;  %v1811_v15 = vsub.f32 %v3370_v18, %v1772_v17  ;;  %v1774_v4 = vmul.f32 0.6931472, %v2593_v0  ;;  %2594 = vlog2.f32 %v1716_v2 }
 0x6ac   :  { %v1718_v48 = vpop.xlane.xlu1 %1717 }
 0x6ad   :  { %1843 = vst [vmem:[%s3529_s8 + $0xc0] sm:$0xff] %v1811_v15  ;;  %v1812_v6 = vsub.f32 %v3374_v7, %v1774_v4  ;;  %2596 = vlog2.f32 %v1718_v48 }
 0x6ae   :  { %v1720_v1 = vpop.xlane.xlu0 %1719 }
 0x6af   :  { %1844 = vst [vmem:[%s3529_s8 + $0xc8] sm:$0xff] %v1812_v6  ;;  %2598 = vlog2.f32 %v1720_v1 }
 0x6b0   :  { %v1722_v38 = vpop.xlane.xlu1 %1721 }
 0x6b1   :  { %2600 = vlog2.f32 %v1722_v38 }
 0x6b5   :  { %v2595_v25 = vpop.eup %2594 }
 0x6b6   :  { %v1780_v18 = vmul.f32 0.6931472, %v2595_v25 }
 0x6b7   :  { %v2597_v49 = vpop.eup %2596 }
 0x6b8   :  { %v1815_v40 = vsub.f32 %v3378_v51, %v1780_v18  ;;  %v1782_v20 = vmul.f32 0.6931472, %v2597_v49 }
 0x6b9   :  { %v2599_v42 = vpop.eup %2598 }
 0x6ba   :  { %1847 = vst [vmem:[%s3529_s8 + $0xe0] sm:$0xff] %v1815_v40  ;;  %v1816_v7 = vsub.f32 %v3382_v56, %v1782_v20  ;;  %v1784_v50 = vmul.f32 0.6931472, %v2599_v42 }
 0x6bb   :  { %v2601_v34 = vpop.eup %2600 }
 0x6bc   :  { %1848 = vst [vmem:[%s3529_s8 + $0xe8] sm:$0xff] %v1816_v7  ;;  %v1817_v26 = vsub.f32 %v3386_v32, %v1784_v50  ;;  %v1786_v41 = vmul.f32 0.6931472, %v2601_v34 }
 0x6be   :  { %1849 = vst [vmem:[%s3529_s8 + $0xf0] sm:$0xff] %v1817_v26  ;;  %v1818_v51 = vsub.f32 %v3390_v55, %v1786_v41 }
 0x6c0   :  { %1850 = vst [vmem:[%s3529_s8 + $0xf8] sm:$0xff] %v1818_v51 }

</bundles_post_ra>
